<compile_context>
chip_gen: v6e
topology: v6e:2x2x1
jax: 0.10.0
libtpu: 0.0.40
codegen_flags: <defaults>
</compile_context>

<pallas_src>
import functools

import numpy as np

import jax
import jax.numpy as jnp
from jax import lax
from jax.experimental import pallas as pl
from jax.experimental.pallas import tpu as pltpu

BN_EPS = 1e-5
_PAD = 128   # lane padding on each side of the flattened N*H*W axis in the
             # shift scratch; must satisfy _PAD >= W + 1 (asserted in wrapper).


def _robust_block_kernel(x_ref, mask_ref, w1_ref, b1_ref, g1_ref, be1_ref,
                         wsep_ref, bsep_ref, w2_ref, b2_ref, g2_ref, be2_ref,
                         o_ref, apad_ref, slab_ref, *, W):
    Ci, L = x_ref.shape
    inv_L = 1.0 / L

    # Flat-axis offset of each 3x3 tap, row-major over (dy, dx).
    offs = tuple(dy * W + dx for dy in (-1, 0, 1) for dx in (-1, 0, 1))

    # Tap-validity mask (precomputed in the wrapper), hoisted to bool ONCE and
    # reused by all four conv sites.  The same select also kills the
    # never-written border columns of apad_ref, so no scratch zeroing at all.
    maskb = mask_ref[...] != 0.0

    def conv3x3(act, w_flat, bias):
        # im2col slab build: one aligned interior store of the activation, then
        # each tap's statically shifted window is packed into its Ci-row slot
        # of the (9*Ci, L) slab.  One select + ONE matmul downstream.
        apad_ref[:, _PAD:_PAD + L] = act
        for s, off in enumerate(offs):
            slab_ref[s * Ci:(s + 1) * Ci, :] = (
                apad_ref[:, _PAD + off:_PAD + off + L])
        slab = jnp.where(maskb, slab_ref[...], 0.0)
        return jnp.dot(w_flat, slab, preferred_element_type=jnp.float32) + bias

    def bn_relu(v, gamma, beta):
        # Training-mode BatchNorm2d (biased batch stats over all N*H*W
        # columns), single pass, folded to a per-channel scale/shift.
        mean = jnp.sum(v, axis=1, keepdims=True) * inv_L
        ex2 = jnp.sum(v * v, axis=1, keepdims=True) * inv_L
        a = gamma * lax.rsqrt(ex2 - mean * mean + BN_EPS)
        b = beta - mean * a
        return jnp.maximum(v * a + b, 0.0)

    x = x_ref[...]
    w1 = w1_ref[...]
    b1 = b1_ref[...]
    g1 = g1_ref[...]
    be1 = be1_ref[...]

    x1 = conv3x3(x, w1, b1)                                   # conv1
    x3 = bn_relu(x1, g1, be1)                                 # norm1 + relu
    x4 = conv3x3(x3, wsep_ref[...], bsep_ref[...])            # separable (fused dw+pw)
    x5 = conv3x3(x4, w1, b1)                                  # conv1 (shared weights)
    x7 = bn_relu(x5, g1, be1)                                 # norm1 (shared) + relu
    y = conv3x3(x + x7, w2_ref[...], b2_ref[...])             # residual add -> conv2
    o_ref[...] = bn_relu(y, g2_ref[...], be2_ref[...]).astype(o_ref.dtype)  # norm2+relu


def _zero_index_map(nd):
    def im(*_):
        return (0,) * nd
    return im


def _tap_mask(N, Ci, H, W):
    """(9*Ci, N*H*W) f32 tap-validity mask, tap-major rows (matches the slab)."""
    yy, xx = np.meshgrid(np.arange(H), np.arange(W), indexing="ij")
    yy = np.tile(yy.reshape(-1), N)
    xx = np.tile(xx.reshape(-1), N)
    rows = []
    for dy in (-1, 0, 1):
        for dx in (-1, 0, 1):
            v = ((yy + dy >= 0) & (yy + dy < H) &
                 (xx + dx >= 0) & (xx + dx < W))
            rows.append(np.broadcast_to(v, (Ci, v.size)))
    return np.concatenate(rows, axis=0).astype(np.float32)


def robust_residual_block(x_nchw, params):
    N, Ci, H, W = x_nchw.shape
    Co = params["w2"].shape[0]
    L = N * H * W
    assert W + 1 <= _PAD, f"_PAD ({_PAD}) must be >= W + 1 ({W + 1})"

    # Channels -> sublanes, flattened N*H*W -> lanes.
    # TODO(synk): at production sizes keep the (C, N*H*W) layout across
    # consecutive network blocks (or read NCHW via an N-indexed BlockSpec)
    # instead of paying these wrapper transposes per block.
    x_t = jnp.transpose(x_nchw, (1, 0, 2, 3)).reshape(Ci, L).astype(jnp.float32)

    # --- wrapper-side weight prep (im2col layout: tap-major, channel-minor) ---
    w1f = jnp.transpose(params["w1"], (0, 2, 3, 1)).reshape(Ci, 9 * Ci)
    w2f = jnp.transpose(params["w2"], (0, 2, 3, 1)).reshape(Co, 9 * Ci)

    # Separable_Block folded into ONE im2col matmul (exact reassociation):
    #   point(depth(v)) = W_sep @ slab(v) + (pw @ bdw + bpw),
    #   W_sep[o, s*Ci + i] = pw[o, i] * dw[i, s]   (channel-diagonal depthwise).
    dw_flat = params["dw"][:, 0].reshape(Ci, 9)                           # (Ci, 9)
    pw = params["pw"][:, :, 0, 0]                                         # (Ci, Ci)
    wsep = (pw[:, None, :] * jnp.transpose(dw_flat)[None, :, :]).reshape(Ci, 9 * Ci)
    bsep = jnp.sum(pw * params["bdw"][None, :], axis=1) + params["bpw"]   # (Ci,)

    mask = jnp.asarray(_tap_mask(N, Ci, H, W))                            # (9*Ci, L)

    col = lambda v: v.reshape(-1, 1).astype(jnp.float32)
    args = (x_t, mask,
            w1f, col(params["b1"]), col(params["g1"]), col(params["be1"]),
            wsep, col(bsep),
            w2f, col(params["b2"]), col(params["g2"]), col(params["be2"]))
    # NOTE: matmul operands stay f32; casting weights + slab to bf16 would ~3x
    # MXU throughput on v6e/v7x but needs the 5e-3 tolerance vs. the f32
    # HIGHEST reference re-validated first (per the review's correctness note).

    in_specs = [pl.BlockSpec(a.shape, _zero_index_map(a.ndim)) for a in args]
    kernel = functools.partial(_robust_block_kernel, W=W)

    # TODO(synk): for large N*H*W (esp. v7x: 64 MiB VMEM, 2 TensorCores) tile
    # the grid over N/L with dimension_semantics=("parallel",) and a two-pass
    # BatchNorm (per-tile sum/sumsq -> combine -> normalize); at this shape the
    # whole problem is <1 MiB so a single grid step is fastest.
    out_t = pl.pallas_call(
        kernel,
        out_shape=jax.ShapeDtypeStruct((Co, L), jnp.float32),
        grid_spec=pltpu.PrefetchScalarGridSpec(
            num_scalar_prefetch=0,
            grid=(1,),
            in_specs=in_specs,
            out_specs=pl.BlockSpec((Co, L), _zero_index_map(2)),
            scratch_shapes=[pltpu.VMEM((Ci, L + 2 * _PAD), jnp.float32),
                            pltpu.VMEM((9 * Ci, L), jnp.float32)],
        ),
        compiler_params=pltpu.CompilerParams(
            dimension_semantics=("arbitrary",),
            vmem_limit_bytes=32 * 1024 * 1024),
    )(*args)

    return jnp.transpose(out_t.reshape(Co, N, H, W), (1, 0, 2, 3))


def init_params(key, in_ch, out_ch):
    ks = jax.random.split(key, 12)
    n = lambda k, shp, s=0.1: s * jax.random.normal(k, shp, dtype=jnp.float32)
    return dict(
        w1=n(ks[0], (in_ch, in_ch, 3, 3)),     # conv1 weight (OIHW)
        b1=n(ks[1], (in_ch,)),                 # conv1 bias
        g1=1.0 + n(ks[2], (in_ch,)),           # norm1 gamma
        be1=n(ks[3], (in_ch,)),                # norm1 beta
        dw=n(ks[4], (in_ch, 1, 3, 3)),         # depthwise conv weight (groups=in_ch)
        bdw=n(ks[5], (in_ch,)),                # depthwise conv bias
        pw=n(ks[6], (in_ch, in_ch, 1, 1)),     # pointwise conv weight
        bpw=n(ks[7], (in_ch,)),                # pointwise conv bias
        w2=n(ks[8], (out_ch, in_ch, 3, 3)),    # conv2 weight
        b2=n(ks[9], (out_ch,)),                # conv2 bias
        g2=1.0 + n(ks[10], (out_ch,)),         # norm2 gamma
        be2=n(ks[11], (out_ch,)),              # norm2 beta
    )


def reference_forward(x, p):
    """Pure-JAX (lax.conv) reference of the PyTorch forward, NCHW."""
    dn = ("NCHW", "OIHW", "NCHW")
    hi = lax.Precision.HIGHEST

    def conv(v, w, b, groups=1, pad=1):
        out = lax.conv_general_dilated(
            v, w, (1, 1), ((pad, pad), (pad, pad)),
            dimension_numbers=dn, feature_group_count=groups, precision=hi)
        return out + b[None, :, None, None]

    def bn(v, g, be):
        mean = jnp.mean(v, axis=(0, 2, 3), keepdims=True)
        var = jnp.mean((v - mean) ** 2, axis=(0, 2, 3), keepdims=True)
        return ((v - mean) * lax.rsqrt(var + BN_EPS) * g[None, :, None, None]
                + be[None, :, None, None])

    relu = lambda v: jnp.maximum(v, 0.0)
    x1 = conv(x, p["w1"], p["b1"])
    x3 = relu(bn(x1, p["g1"], p["be1"]))
    x4 = conv(x3, p["dw"], p["bdw"], groups=x.shape[1])
    x4 = conv(x4, p["pw"], p["bpw"], pad=0)
    x5 = conv(x4, p["w1"], p["b1"])
    x7 = relu(bn(x5, p["g1"], p["be1"]))
    out = x + x7
    out = conv(out, p["w2"], p["b2"])
    return relu(bn(out, p["g2"], p["be2"]))


if __name__ == "__main__":
    key = jax.random.PRNGKey(0)
    k_x, k_p = jax.random.split(key)
    in_ch, out_ch, N, H, W = 4, 8, 2, 16, 16

    x = jax.random.normal(k_x, (N, in_ch, H, W), dtype=jnp.float32)
    params = init_params(k_p, in_ch, out_ch)

    out = jax.block_until_ready(robust_residual_block(x, params))

    ref = jax.block_until_ready(reference_forward(x, params))
    assert out.shape == ref.shape == (N, out_ch, H, W)
    max_err = float(jnp.max(jnp.abs(out - ref)))
    if max_err > 5e-3:
        raise AssertionError(f"kernel/reference mismatch: max abs err {max_err}")

    print("KERNEL_OK")
</pallas_src>

<mosaic_0001>
module attributes {stable_mosaic.version = 11 : i64} {
  func.func @_robust_block_kernel(%arg0: i32, %arg1: memref<4x512xf32, #tpu.memory_space<vmem>>, %arg2: memref<36x512xf32, #tpu.memory_space<vmem>>, %arg3: memref<4x36xf32, #tpu.memory_space<vmem>>, %arg4: memref<4x1xf32, #tpu.memory_space<vmem>>, %arg5: memref<4x1xf32, #tpu.memory_space<vmem>>, %arg6: memref<4x1xf32, #tpu.memory_space<vmem>>, %arg7: memref<4x36xf32, #tpu.memory_space<vmem>>, %arg8: memref<4x1xf32, #tpu.memory_space<vmem>>, %arg9: memref<8x36xf32, #tpu.memory_space<vmem>>, %arg10: memref<8x1xf32, #tpu.memory_space<vmem>>, %arg11: memref<8x1xf32, #tpu.memory_space<vmem>>, %arg12: memref<8x1xf32, #tpu.memory_space<vmem>>, %arg13: memref<8x512xf32, #tpu.memory_space<vmem>>, %arg14: memref<4x768xf32, #tpu.memory_space<vmem>>, %arg15: memref<36x512xf32, #tpu.memory_space<vmem>>) attributes {dimension_semantics = [#tpu.dimension_semantics<arbitrary>], iteration_bounds = array<i64: 1>, scalar_prefetch = 0 : i64, scratch_operands = 2 : i64, tpu.core_type = #tpu.core_type<tc>, window_params = [{pipeline_mode = #tpu.pipeline_mode<synchronous>, transform_indices = @transform_0, window_bounds = array<i64: 4, 512>}, {pipeline_mode = #tpu.pipeline_mode<synchronous>, transform_indices = @transform_1, window_bounds = array<i64: 36, 512>}, {pipeline_mode = #tpu.pipeline_mode<synchronous>, transform_indices = @transform_2, window_bounds = array<i64: 4, 36>}, {pipeline_mode = #tpu.pipeline_mode<synchronous>, transform_indices = @transform_3, window_bounds = array<i64: 4, 1>}, {pipeline_mode = #tpu.pipeline_mode<synchronous>, transform_indices = @transform_4, window_bounds = array<i64: 4, 1>}, {pipeline_mode = #tpu.pipeline_mode<synchronous>, transform_indices = @transform_5, window_bounds = array<i64: 4, 1>}, {pipeline_mode = #tpu.pipeline_mode<synchronous>, transform_indices = @transform_6, window_bounds = array<i64: 4, 36>}, {pipeline_mode = #tpu.pipeline_mode<synchronous>, transform_indices = @transform_7, window_bounds = array<i64: 4, 1>}, {pipeline_mode = #tpu.pipeline_mode<synchronous>, transform_indices = @transform_8, window_bounds = array<i64: 8, 36>}, {pipeline_mode = #tpu.pipeline_mode<synchronous>, transform_indices = @transform_9, window_bounds = array<i64: 8, 1>}, {pipeline_mode = #tpu.pipeline_mode<synchronous>, transform_indices = @transform_10, window_bounds = array<i64: 8, 1>}, {pipeline_mode = #tpu.pipeline_mode<synchronous>, transform_indices = @transform_11, window_bounds = array<i64: 8, 1>}, {pipeline_mode = #tpu.pipeline_mode<synchronous>, transform_indices = @transform_12, window_bounds = array<i64: 8, 512>}]} {
    %c0 = arith.constant 0 : index
    %c0_0 = arith.constant 0 : index
    %0 = vector.load %arg2[%c0, %c0_0] : memref<36x512xf32, #tpu.memory_space<vmem>>, vector<36x512xf32>
    %cst = arith.constant 0.000000e+00 : f32
    %1 = vector.broadcast %cst : f32 to vector<36x512xf32>
    %2 = arith.cmpf one, %0, %1 : vector<36x512xf32>
    %c0_1 = arith.constant 0 : index
    %c0_2 = arith.constant 0 : index
    %3 = vector.load %arg1[%c0_1, %c0_2] : memref<4x512xf32, #tpu.memory_space<vmem>>, vector<4x512xf32>
    %c0_3 = arith.constant 0 : index
    %c0_4 = arith.constant 0 : index
    %4 = vector.load %arg3[%c0_3, %c0_4] : memref<4x36xf32, #tpu.memory_space<vmem>>, vector<4x36xf32>
    %c0_5 = arith.constant 0 : index
    %c0_6 = arith.constant 0 : index
    %5 = vector.load %arg4[%c0_5, %c0_6] : memref<4x1xf32, #tpu.memory_space<vmem>>, vector<4x1xf32>
    %c0_7 = arith.constant 0 : index
    %c0_8 = arith.constant 0 : index
    %6 = vector.load %arg5[%c0_7, %c0_8] : memref<4x1xf32, #tpu.memory_space<vmem>>, vector<4x1xf32>
    %c0_9 = arith.constant 0 : index
    %c0_10 = arith.constant 0 : index
    %7 = vector.load %arg6[%c0_9, %c0_10] : memref<4x1xf32, #tpu.memory_space<vmem>>, vector<4x1xf32>
    %c0_11 = arith.constant 0 : index
    %c128 = arith.constant 128 : index
    %8 = vector.load %arg14[%c0_11, %c128] : memref<4x768xf32, #tpu.memory_space<vmem>>, vector<4x512xf32>
    tpu.vector_store %arg14[%c0_11, %c128], %3 {strides = array<i32>} : memref<4x768xf32, #tpu.memory_space<vmem>>, vector<4x512xf32>,
    %c0_12 = arith.constant 0 : index
    %c111 = arith.constant 111 : index
    %9 = vector.load %arg14[%c0_12, %c111] : memref<4x768xf32, #tpu.memory_space<vmem>>, vector<4x512xf32>
    %c0_13 = arith.constant 0 : index
    %c0_14 = arith.constant 0 : index
    %10 = vector.load %arg15[%c0_13, %c0_14] : memref<36x512xf32, #tpu.memory_space<vmem>>, vector<4x512xf32>
    tpu.vector_store %arg15[%c0_13, %c0_14], %9 {strides = array<i32>} : memref<36x512xf32, #tpu.memory_space<vmem>>, vector<4x512xf32>,
    %c0_15 = arith.constant 0 : index
    %c112 = arith.constant 112 : index
    %11 = vector.load %arg14[%c0_15, %c112] : memref<4x768xf32, #tpu.memory_space<vmem>>, vector<4x512xf32>
    %c4 = arith.constant 4 : index
    %c0_16 = arith.constant 0 : index
    %12 = vector.load %arg15[%c4, %c0_16] : memref<36x512xf32, #tpu.memory_space<vmem>>, vector<4x512xf32>
    tpu.vector_store %arg15[%c4, %c0_16], %11 {strides = array<i32>} : memref<36x512xf32, #tpu.memory_space<vmem>>, vector<4x512xf32>,
    %c0_17 = arith.constant 0 : index
    %c113 = arith.constant 113 : index
    %13 = vector.load %arg14[%c0_17, %c113] : memref<4x768xf32, #tpu.memory_space<vmem>>, vector<4x512xf32>
    %c8 = arith.constant 8 : index
    %c0_18 = arith.constant 0 : index
    %14 = vector.load %arg15[%c8, %c0_18] : memref<36x512xf32, #tpu.memory_space<vmem>>, vector<4x512xf32>
    tpu.vector_store %arg15[%c8, %c0_18], %13 {strides = array<i32>} : memref<36x512xf32, #tpu.memory_space<vmem>>, vector<4x512xf32>,
    %c0_19 = arith.constant 0 : index
    %c127 = arith.constant 127 : index
    %15 = vector.load %arg14[%c0_19, %c127] : memref<4x768xf32, #tpu.memory_space<vmem>>, vector<4x512xf32>
    %c12 = arith.constant 12 : index
    %c0_20 = arith.constant 0 : index
    %16 = vector.load %arg15[%c12, %c0_20] : memref<36x512xf32, #tpu.memory_space<vmem>>, vector<4x512xf32>
    tpu.vector_store %arg15[%c12, %c0_20], %15 {strides = array<i32>} : memref<36x512xf32, #tpu.memory_space<vmem>>, vector<4x512xf32>,
    %c0_21 = arith.constant 0 : index
    %c128_22 = arith.constant 128 : index
    %17 = vector.load %arg14[%c0_21, %c128_22] : memref<4x768xf32, #tpu.memory_space<vmem>>, vector<4x512xf32>
    %c16 = arith.constant 16 : index
    %c0_23 = arith.constant 0 : index
    %18 = vector.load %arg15[%c16, %c0_23] : memref<36x512xf32, #tpu.memory_space<vmem>>, vector<4x512xf32>
    tpu.vector_store %arg15[%c16, %c0_23], %17 {strides = array<i32>} : memref<36x512xf32, #tpu.memory_space<vmem>>, vector<4x512xf32>,
    %c0_24 = arith.constant 0 : index
    %c129 = arith.constant 129 : index
    %19 = vector.load %arg14[%c0_24, %c129] : memref<4x768xf32, #tpu.memory_space<vmem>>, vector<4x512xf32>
    %c20 = arith.constant 20 : index
    %c0_25 = arith.constant 0 : index
    %20 = vector.load %arg15[%c20, %c0_25] : memref<36x512xf32, #tpu.memory_space<vmem>>, vector<4x512xf32>
    tpu.vector_store %arg15[%c20, %c0_25], %19 {strides = array<i32>} : memref<36x512xf32, #tpu.memory_space<vmem>>, vector<4x512xf32>,
    %c0_26 = arith.constant 0 : index
    %c143 = arith.constant 143 : index
    %21 = vector.load %arg14[%c0_26, %c143] : memref<4x768xf32, #tpu.memory_space<vmem>>, vector<4x512xf32>
    %c24 = arith.constant 24 : index
    %c0_27 = arith.constant 0 : index
    %22 = vector.load %arg15[%c24, %c0_27] : memref<36x512xf32, #tpu.memory_space<vmem>>, vector<4x512xf32>
    tpu.vector_store %arg15[%c24, %c0_27], %21 {strides = array<i32>} : memref<36x512xf32, #tpu.memory_space<vmem>>, vector<4x512xf32>,
    %c0_28 = arith.constant 0 : index
    %c144 = arith.constant 144 : index
    %23 = vector.load %arg14[%c0_28, %c144] : memref<4x768xf32, #tpu.memory_space<vmem>>, vector<4x512xf32>
    %c28 = arith.constant 28 : index
    %c0_29 = arith.constant 0 : index
    %24 = vector.load %arg15[%c28, %c0_29] : memref<36x512xf32, #tpu.memory_space<vmem>>, vector<4x512xf32>
    tpu.vector_store %arg15[%c28, %c0_29], %23 {strides = array<i32>} : memref<36x512xf32, #tpu.memory_space<vmem>>, vector<4x512xf32>,
    %c0_30 = arith.constant 0 : index
    %c145 = arith.constant 145 : index
    %25 = vector.load %arg14[%c0_30, %c145] : memref<4x768xf32, #tpu.memory_space<vmem>>, vector<4x512xf32>
    %c32 = arith.constant 32 : index
    %c0_31 = arith.constant 0 : index
    %26 = vector.load %arg15[%c32, %c0_31] : memref<36x512xf32, #tpu.memory_space<vmem>>, vector<4x512xf32>
    tpu.vector_store %arg15[%c32, %c0_31], %25 {strides = array<i32>} : memref<36x512xf32, #tpu.memory_space<vmem>>, vector<4x512xf32>,
    %c0_32 = arith.constant 0 : index
    %c0_33 = arith.constant 0 : index
    %27 = vector.load %arg15[%c0_32, %c0_33] : memref<36x512xf32, #tpu.memory_space<vmem>>, vector<36x512xf32>
    %cst_34 = arith.constant 0.000000e+00 : f32
    %28 = vector.broadcast %cst_34 : f32 to vector<36x512xf32>
    %29 = arith.select %2, %27, %28 : vector<36x512xi1>, vector<36x512xf32>
    %cst_35 = arith.constant dense<0.000000e+00> : vector<4x512xf32>
    %30 = tpu.matmul %4, %29, %cst_35 {dimension_numbers = #tpu.dot_dimension_numbers<[1], [0], [0], [1], [0, 0, 1, 1], [], []>} : vector<4x36xf32>, vector<36x512xf32>, vector<4x512xf32> -> vector<4x512xf32>
    %31 = vector.broadcast %5 : vector<4x1xf32> to vector<4x512xf32>
    %32 = arith.addf %30, %31 : vector<4x512xf32>
    %cst_36 = arith.constant dense<0.000000e+00> : vector<4xf32>
    %33 = vector.multi_reduction <add>, %32, %cst_36 [1] : vector<4x512xf32> to vector<4xf32>
    %34 = vector.shape_cast %33 : vector<4xf32> to vector<4x1xf32>
    %cst_37 = arith.constant 0.001953125 : f32
    %35 = vector.broadcast %cst_37 : f32 to vector<4x1xf32>
    %36 = arith.mulf %34, %35 : vector<4x1xf32>
    %37 = arith.mulf %32, %32 : vector<4x512xf32>
    %cst_38 = arith.constant dense<0.000000e+00> : vector<4xf32>
    %38 = vector.multi_reduction <add>, %37, %cst_38 [1] : vector<4x512xf32> to vector<4xf32>
    %39 = vector.shape_cast %38 : vector<4xf32> to vector<4x1xf32>
    %cst_39 = arith.constant 0.001953125 : f32
    %40 = vector.broadcast %cst_39 : f32 to vector<4x1xf32>
    %41 = arith.mulf %39, %40 : vector<4x1xf32>
    %42 = arith.mulf %36, %36 : vector<4x1xf32>
    %43 = arith.subf %41, %42 : vector<4x1xf32>
    %cst_40 = arith.constant 9.99999974E-6 : f32
    %44 = vector.broadcast %cst_40 : f32 to vector<4x1xf32>
    %45 = arith.addf %43, %44 : vector<4x1xf32>
    %46 = math.rsqrt %45 : vector<4x1xf32>
    %47 = arith.mulf %6, %46 : vector<4x1xf32>
    %48 = arith.mulf %36, %47 : vector<4x1xf32>
    %49 = arith.subf %7, %48 : vector<4x1xf32>
    %50 = vector.broadcast %47 : vector<4x1xf32> to vector<4x512xf32>
    %51 = arith.mulf %32, %50 : vector<4x512xf32>
    %52 = vector.broadcast %49 : vector<4x1xf32> to vector<4x512xf32>
    %53 = arith.addf %51, %52 : vector<4x512xf32>
    %cst_41 = arith.constant 0.000000e+00 : f32
    %54 = vector.broadcast %cst_41 : f32 to vector<4x512xf32>
    %55 = arith.maximumf %53, %54 : vector<4x512xf32>
    %c0_42 = arith.constant 0 : index
    %c0_43 = arith.constant 0 : index
    %56 = vector.load %arg7[%c0_42, %c0_43] : memref<4x36xf32, #tpu.memory_space<vmem>>, vector<4x36xf32>
    %c0_44 = arith.constant 0 : index
    %c0_45 = arith.constant 0 : index
    %57 = vector.load %arg8[%c0_44, %c0_45] : memref<4x1xf32, #tpu.memory_space<vmem>>, vector<4x1xf32>
    %c0_46 = arith.constant 0 : index
    %c128_47 = arith.constant 128 : index
    %58 = vector.load %arg14[%c0_46, %c128_47] : memref<4x768xf32, #tpu.memory_space<vmem>>, vector<4x512xf32>
    tpu.vector_store %arg14[%c0_46, %c128_47], %55 {strides = array<i32>} : memref<4x768xf32, #tpu.memory_space<vmem>>, vector<4x512xf32>,
    %c0_48 = arith.constant 0 : index
    %c111_49 = arith.constant 111 : index
    %59 = vector.load %arg14[%c0_48, %c111_49] : memref<4x768xf32, #tpu.memory_space<vmem>>, vector<4x512xf32>
    %c0_50 = arith.constant 0 : index
    %c0_51 = arith.constant 0 : index
    %60 = vector.load %arg15[%c0_50, %c0_51] : memref<36x512xf32, #tpu.memory_space<vmem>>, vector<4x512xf32>
    tpu.vector_store %arg15[%c0_50, %c0_51], %59 {strides = array<i32>} : memref<36x512xf32, #tpu.memory_space<vmem>>, vector<4x512xf32>,
    %c0_52 = arith.constant 0 : index
    %c112_53 = arith.constant 112 : index
    %61 = vector.load %arg14[%c0_52, %c112_53] : memref<4x768xf32, #tpu.memory_space<vmem>>, vector<4x512xf32>
    %c4_54 = arith.constant 4 : index
    %c0_55 = arith.constant 0 : index
    %62 = vector.load %arg15[%c4_54, %c0_55] : memref<36x512xf32, #tpu.memory_space<vmem>>, vector<4x512xf32>
    tpu.vector_store %arg15[%c4_54, %c0_55], %61 {strides = array<i32>} : memref<36x512xf32, #tpu.memory_space<vmem>>, vector<4x512xf32>,
    %c0_56 = arith.constant 0 : index
    %c113_57 = arith.constant 113 : index
    %63 = vector.load %arg14[%c0_56, %c113_57] : memref<4x768xf32, #tpu.memory_space<vmem>>, vector<4x512xf32>
    %c8_58 = arith.constant 8 : index
    %c0_59 = arith.constant 0 : index
    %64 = vector.load %arg15[%c8_58, %c0_59] : memref<36x512xf32, #tpu.memory_space<vmem>>, vector<4x512xf32>
    tpu.vector_store %arg15[%c8_58, %c0_59], %63 {strides = array<i32>} : memref<36x512xf32, #tpu.memory_space<vmem>>, vector<4x512xf32>,
    %c0_60 = arith.constant 0 : index
    %c127_61 = arith.constant 127 : index
    %65 = vector.load %arg14[%c0_60, %c127_61] : memref<4x768xf32, #tpu.memory_space<vmem>>, vector<4x512xf32>
    %c12_62 = arith.constant 12 : index
    %c0_63 = arith.constant 0 : index
    %66 = vector.load %arg15[%c12_62, %c0_63] : memref<36x512xf32, #tpu.memory_space<vmem>>, vector<4x512xf32>
    tpu.vector_store %arg15[%c12_62, %c0_63], %65 {strides = array<i32>} : memref<36x512xf32, #tpu.memory_space<vmem>>, vector<4x512xf32>,
    %c0_64 = arith.constant 0 : index
    %c128_65 = arith.constant 128 : index
    %67 = vector.load %arg14[%c0_64, %c128_65] : memref<4x768xf32, #tpu.memory_space<vmem>>, vector<4x512xf32>
    %c16_66 = arith.constant 16 : index
    %c0_67 = arith.constant 0 : index
    %68 = vector.load %arg15[%c16_66, %c0_67] : memref<36x512xf32, #tpu.memory_space<vmem>>, vector<4x512xf32>
    tpu.vector_store %arg15[%c16_66, %c0_67], %67 {strides = array<i32>} : memref<36x512xf32, #tpu.memory_space<vmem>>, vector<4x512xf32>,
    %c0_68 = arith.constant 0 : index
    %c129_69 = arith.constant 129 : index
    %69 = vector.load %arg14[%c0_68, %c129_69] : memref<4x768xf32, #tpu.memory_space<vmem>>, vector<4x512xf32>
    %c20_70 = arith.constant 20 : index
    %c0_71 = arith.constant 0 : index
    %70 = vector.load %arg15[%c20_70, %c0_71] : memref<36x512xf32, #tpu.memory_space<vmem>>, vector<4x512xf32>
    tpu.vector_store %arg15[%c20_70, %c0_71], %69 {strides = array<i32>} : memref<36x512xf32, #tpu.memory_space<vmem>>, vector<4x512xf32>,
    %c0_72 = arith.constant 0 : index
    %c143_73 = arith.constant 143 : index
    %71 = vector.load %arg14[%c0_72, %c143_73] : memref<4x768xf32, #tpu.memory_space<vmem>>, vector<4x512xf32>
    %c24_74 = arith.constant 24 : index
    %c0_75 = arith.constant 0 : index
    %72 = vector.load %arg15[%c24_74, %c0_75] : memref<36x512xf32, #tpu.memory_space<vmem>>, vector<4x512xf32>
    tpu.vector_store %arg15[%c24_74, %c0_75], %71 {strides = array<i32>} : memref<36x512xf32, #tpu.memory_space<vmem>>, vector<4x512xf32>,
    %c0_76 = arith.constant 0 : index
    %c144_77 = arith.constant 144 : index
    %73 = vector.load %arg14[%c0_76, %c144_77] : memref<4x768xf32, #tpu.memory_space<vmem>>, vector<4x512xf32>
    %c28_78 = arith.constant 28 : index
    %c0_79 = arith.constant 0 : index
    %74 = vector.load %arg15[%c28_78, %c0_79] : memref<36x512xf32, #tpu.memory_space<vmem>>, vector<4x512xf32>
    tpu.vector_store %arg15[%c28_78, %c0_79], %73 {strides = array<i32>} : memref<36x512xf32, #tpu.memory_space<vmem>>, vector<4x512xf32>,
    %c0_80 = arith.constant 0 : index
    %c145_81 = arith.constant 145 : index
    %75 = vector.load %arg14[%c0_80, %c145_81] : memref<4x768xf32, #tpu.memory_space<vmem>>, vector<4x512xf32>
    %c32_82 = arith.constant 32 : index
    %c0_83 = arith.constant 0 : index
    %76 = vector.load %arg15[%c32_82, %c0_83] : memref<36x512xf32, #tpu.memory_space<vmem>>, vector<4x512xf32>
    tpu.vector_store %arg15[%c32_82, %c0_83], %75 {strides = array<i32>} : memref<36x512xf32, #tpu.memory_space<vmem>>, vector<4x512xf32>,
    %c0_84 = arith.constant 0 : index
    %c0_85 = arith.constant 0 : index
    %77 = vector.load %arg15[%c0_84, %c0_85] : memref<36x512xf32, #tpu.memory_space<vmem>>, vector<36x512xf32>
    %cst_86 = arith.constant 0.000000e+00 : f32
    %78 = vector.broadcast %cst_86 : f32 to vector<36x512xf32>
    %79 = arith.select %2, %77, %78 : vector<36x512xi1>, vector<36x512xf32>
    %cst_87 = arith.constant dense<0.000000e+00> : vector<4x512xf32>
    %80 = tpu.matmul %56, %79, %cst_87 {dimension_numbers = #tpu.dot_dimension_numbers<[1], [0], [0], [1], [0, 0, 1, 1], [], []>} : vector<4x36xf32>, vector<36x512xf32>, vector<4x512xf32> -> vector<4x512xf32>
    %81 = vector.broadcast %57 : vector<4x1xf32> to vector<4x512xf32>
    %82 = arith.addf %80, %81 : vector<4x512xf32>
    %c0_88 = arith.constant 0 : index
    %c128_89 = arith.constant 128 : index
    %83 = vector.load %arg14[%c0_88, %c128_89] : memref<4x768xf32, #tpu.memory_space<vmem>>, vector<4x512xf32>
    tpu.vector_store %arg14[%c0_88, %c128_89], %82 {strides = array<i32>} : memref<4x768xf32, #tpu.memory_space<vmem>>, vector<4x512xf32>,
    %c0_90 = arith.constant 0 : index
    %c111_91 = arith.constant 111 : index
    %84 = vector.load %arg14[%c0_90, %c111_91] : memref<4x768xf32, #tpu.memory_space<vmem>>, vector<4x512xf32>
    %c0_92 = arith.constant 0 : index
    %c0_93 = arith.constant 0 : index
    %85 = vector.load %arg15[%c0_92, %c0_93] : memref<36x512xf32, #tpu.memory_space<vmem>>, vector<4x512xf32>
    tpu.vector_store %arg15[%c0_92, %c0_93], %84 {strides = array<i32>} : memref<36x512xf32, #tpu.memory_space<vmem>>, vector<4x512xf32>,
    %c0_94 = arith.constant 0 : index
    %c112_95 = arith.constant 112 : index
    %86 = vector.load %arg14[%c0_94, %c112_95] : memref<4x768xf32, #tpu.memory_space<vmem>>, vector<4x512xf32>
    %c4_96 = arith.constant 4 : index
    %c0_97 = arith.constant 0 : index
    %87 = vector.load %arg15[%c4_96, %c0_97] : memref<36x512xf32, #tpu.memory_space<vmem>>, vector<4x512xf32>
    tpu.vector_store %arg15[%c4_96, %c0_97], %86 {strides = array<i32>} : memref<36x512xf32, #tpu.memory_space<vmem>>, vector<4x512xf32>,
    %c0_98 = arith.constant 0 : index
    %c113_99 = arith.constant 113 : index
    %88 = vector.load %arg14[%c0_98, %c113_99] : memref<4x768xf32, #tpu.memory_space<vmem>>, vector<4x512xf32>
    %c8_100 = arith.constant 8 : index
    %c0_101 = arith.constant 0 : index
    %89 = vector.load %arg15[%c8_100, %c0_101] : memref<36x512xf32, #tpu.memory_space<vmem>>, vector<4x512xf32>
    tpu.vector_store %arg15[%c8_100, %c0_101], %88 {strides = array<i32>} : memref<36x512xf32, #tpu.memory_space<vmem>>, vector<4x512xf32>,
    %c0_102 = arith.constant 0 : index
    %c127_103 = arith.constant 127 : index
    %90 = vector.load %arg14[%c0_102, %c127_103] : memref<4x768xf32, #tpu.memory_space<vmem>>, vector<4x512xf32>
    %c12_104 = arith.constant 12 : index
    %c0_105 = arith.constant 0 : index
    %91 = vector.load %arg15[%c12_104, %c0_105] : memref<36x512xf32, #tpu.memory_space<vmem>>, vector<4x512xf32>
    tpu.vector_store %arg15[%c12_104, %c0_105], %90 {strides = array<i32>} : memref<36x512xf32, #tpu.memory_space<vmem>>, vector<4x512xf32>,
    %c0_106 = arith.constant 0 : index
    %c128_107 = arith.constant 128 : index
    %92 = vector.load %arg14[%c0_106, %c128_107] : memref<4x768xf32, #tpu.memory_space<vmem>>, vector<4x512xf32>
    %c16_108 = arith.constant 16 : index
    %c0_109 = arith.constant 0 : index
    %93 = vector.load %arg15[%c16_108, %c0_109] : memref<36x512xf32, #tpu.memory_space<vmem>>, vector<4x512xf32>
    tpu.vector_store %arg15[%c16_108, %c0_109], %92 {strides = array<i32>} : memref<36x512xf32, #tpu.memory_space<vmem>>, vector<4x512xf32>,
    %c0_110 = arith.constant 0 : index
    %c129_111 = arith.constant 129 : index
    %94 = vector.load %arg14[%c0_110, %c129_111] : memref<4x768xf32, #tpu.memory_space<vmem>>, vector<4x512xf32>
    %c20_112 = arith.constant 20 : index
    %c0_113 = arith.constant 0 : index
    %95 = vector.load %arg15[%c20_112, %c0_113] : memref<36x512xf32, #tpu.memory_space<vmem>>, vector<4x512xf32>
    tpu.vector_store %arg15[%c20_112, %c0_113], %94 {strides = array<i32>} : memref<36x512xf32, #tpu.memory_space<vmem>>, vector<4x512xf32>,
    %c0_114 = arith.constant 0 : index
    %c143_115 = arith.constant 143 : index
    %96 = vector.load %arg14[%c0_114, %c143_115] : memref<4x768xf32, #tpu.memory_space<vmem>>, vector<4x512xf32>
    %c24_116 = arith.constant 24 : index
    %c0_117 = arith.constant 0 : index
    %97 = vector.load %arg15[%c24_116, %c0_117] : memref<36x512xf32, #tpu.memory_space<vmem>>, vector<4x512xf32>
    tpu.vector_store %arg15[%c24_116, %c0_117], %96 {strides = array<i32>} : memref<36x512xf32, #tpu.memory_space<vmem>>, vector<4x512xf32>,
    %c0_118 = arith.constant 0 : index
    %c144_119 = arith.constant 144 : index
    %98 = vector.load %arg14[%c0_118, %c144_119] : memref<4x768xf32, #tpu.memory_space<vmem>>, vector<4x512xf32>
    %c28_120 = arith.constant 28 : index
    %c0_121 = arith.constant 0 : index
    %99 = vector.load %arg15[%c28_120, %c0_121] : memref<36x512xf32, #tpu.memory_space<vmem>>, vector<4x512xf32>
    tpu.vector_store %arg15[%c28_120, %c0_121], %98 {strides = array<i32>} : memref<36x512xf32, #tpu.memory_space<vmem>>, vector<4x512xf32>,
    %c0_122 = arith.constant 0 : index
    %c145_123 = arith.constant 145 : index
    %100 = vector.load %arg14[%c0_122, %c145_123] : memref<4x768xf32, #tpu.memory_space<vmem>>, vector<4x512xf32>
    %c32_124 = arith.constant 32 : index
    %c0_125 = arith.constant 0 : index
    %101 = vector.load %arg15[%c32_124, %c0_125] : memref<36x512xf32, #tpu.memory_space<vmem>>, vector<4x512xf32>
    tpu.vector_store %arg15[%c32_124, %c0_125], %100 {strides = array<i32>} : memref<36x512xf32, #tpu.memory_space<vmem>>, vector<4x512xf32>,
    %c0_126 = arith.constant 0 : index
    %c0_127 = arith.constant 0 : index
    %102 = vector.load %arg15[%c0_126, %c0_127] : memref<36x512xf32, #tpu.memory_space<vmem>>, vector<36x512xf32>
    %cst_128 = arith.constant 0.000000e+00 : f32
    %103 = vector.broadcast %cst_128 : f32 to vector<36x512xf32>
    %104 = arith.select %2, %102, %103 : vector<36x512xi1>, vector<36x512xf32>
    %cst_129 = arith.constant dense<0.000000e+00> : vector<4x512xf32>
    %105 = tpu.matmul %4, %104, %cst_129 {dimension_numbers = #tpu.dot_dimension_numbers<[1], [0], [0], [1], [0, 0, 1, 1], [], []>} : vector<4x36xf32>, vector<36x512xf32>, vector<4x512xf32> -> vector<4x512xf32>
    %106 = vector.broadcast %5 : vector<4x1xf32> to vector<4x512xf32>
    %107 = arith.addf %105, %106 : vector<4x512xf32>
    %cst_130 = arith.constant dense<0.000000e+00> : vector<4xf32>
    %108 = vector.multi_reduction <add>, %107, %cst_130 [1] : vector<4x512xf32> to vector<4xf32>
    %109 = vector.shape_cast %108 : vector<4xf32> to vector<4x1xf32>
    %cst_131 = arith.constant 0.001953125 : f32
    %110 = vector.broadcast %cst_131 : f32 to vector<4x1xf32>
    %111 = arith.mulf %109, %110 : vector<4x1xf32>
    %112 = arith.mulf %107, %107 : vector<4x512xf32>
    %cst_132 = arith.constant dense<0.000000e+00> : vector<4xf32>
    %113 = vector.multi_reduction <add>, %112, %cst_132 [1] : vector<4x512xf32> to vector<4xf32>
    %114 = vector.shape_cast %113 : vector<4xf32> to vector<4x1xf32>
    %cst_133 = arith.constant 0.001953125 : f32
    %115 = vector.broadcast %cst_133 : f32 to vector<4x1xf32>
    %116 = arith.mulf %114, %115 : vector<4x1xf32>
    %117 = arith.mulf %111, %111 : vector<4x1xf32>
    %118 = arith.subf %116, %117 : vector<4x1xf32>
    %cst_134 = arith.constant 9.99999974E-6 : f32
    %119 = vector.broadcast %cst_134 : f32 to vector<4x1xf32>
    %120 = arith.addf %118, %119 : vector<4x1xf32>
    %121 = math.rsqrt %120 : vector<4x1xf32>
    %122 = arith.mulf %6, %121 : vector<4x1xf32>
    %123 = arith.mulf %111, %122 : vector<4x1xf32>
    %124 = arith.subf %7, %123 : vector<4x1xf32>
    %125 = vector.broadcast %122 : vector<4x1xf32> to vector<4x512xf32>
    %126 = arith.mulf %107, %125 : vector<4x512xf32>
    %127 = vector.broadcast %124 : vector<4x1xf32> to vector<4x512xf32>
    %128 = arith.addf %126, %127 : vector<4x512xf32>
    %cst_135 = arith.constant 0.000000e+00 : f32
    %129 = vector.broadcast %cst_135 : f32 to vector<4x512xf32>
    %130 = arith.maximumf %128, %129 : vector<4x512xf32>
    %131 = arith.addf %3, %130 : vector<4x512xf32>
    %c0_136 = arith.constant 0 : index
    %c0_137 = arith.constant 0 : index
    %132 = vector.load %arg9[%c0_136, %c0_137] : memref<8x36xf32, #tpu.memory_space<vmem>>, vector<8x36xf32>
    %c0_138 = arith.constant 0 : index
    %c0_139 = arith.constant 0 : index
    %133 = vector.load %arg10[%c0_138, %c0_139] : memref<8x1xf32, #tpu.memory_space<vmem>>, vector<8x1xf32>
    %c0_140 = arith.constant 0 : index
    %c128_141 = arith.constant 128 : index
    %134 = vector.load %arg14[%c0_140, %c128_141] : memref<4x768xf32, #tpu.memory_space<vmem>>, vector<4x512xf32>
    tpu.vector_store %arg14[%c0_140, %c128_141], %131 {strides = array<i32>} : memref<4x768xf32, #tpu.memory_space<vmem>>, vector<4x512xf32>,
    %c0_142 = arith.constant 0 : index
    %c111_143 = arith.constant 111 : index
    %135 = vector.load %arg14[%c0_142, %c111_143] : memref<4x768xf32, #tpu.memory_space<vmem>>, vector<4x512xf32>
    %c0_144 = arith.constant 0 : index
    %c0_145 = arith.constant 0 : index
    %136 = vector.load %arg15[%c0_144, %c0_145] : memref<36x512xf32, #tpu.memory_space<vmem>>, vector<4x512xf32>
    tpu.vector_store %arg15[%c0_144, %c0_145], %135 {strides = array<i32>} : memref<36x512xf32, #tpu.memory_space<vmem>>, vector<4x512xf32>,
    %c0_146 = arith.constant 0 : index
    %c112_147 = arith.constant 112 : index
    %137 = vector.load %arg14[%c0_146, %c112_147] : memref<4x768xf32, #tpu.memory_space<vmem>>, vector<4x512xf32>
    %c4_148 = arith.constant 4 : index
    %c0_149 = arith.constant 0 : index
    %138 = vector.load %arg15[%c4_148, %c0_149] : memref<36x512xf32, #tpu.memory_space<vmem>>, vector<4x512xf32>
    tpu.vector_store %arg15[%c4_148, %c0_149], %137 {strides = array<i32>} : memref<36x512xf32, #tpu.memory_space<vmem>>, vector<4x512xf32>,
    %c0_150 = arith.constant 0 : index
    %c113_151 = arith.constant 113 : index
    %139 = vector.load %arg14[%c0_150, %c113_151] : memref<4x768xf32, #tpu.memory_space<vmem>>, vector<4x512xf32>
    %c8_152 = arith.constant 8 : index
    %c0_153 = arith.constant 0 : index
    %140 = vector.load %arg15[%c8_152, %c0_153] : memref<36x512xf32, #tpu.memory_space<vmem>>, vector<4x512xf32>
    tpu.vector_store %arg15[%c8_152, %c0_153], %139 {strides = array<i32>} : memref<36x512xf32, #tpu.memory_space<vmem>>, vector<4x512xf32>,
    %c0_154 = arith.constant 0 : index
    %c127_155 = arith.constant 127 : index
    %141 = vector.load %arg14[%c0_154, %c127_155] : memref<4x768xf32, #tpu.memory_space<vmem>>, vector<4x512xf32>
    %c12_156 = arith.constant 12 : index
    %c0_157 = arith.constant 0 : index
    %142 = vector.load %arg15[%c12_156, %c0_157] : memref<36x512xf32, #tpu.memory_space<vmem>>, vector<4x512xf32>
    tpu.vector_store %arg15[%c12_156, %c0_157], %141 {strides = array<i32>} : memref<36x512xf32, #tpu.memory_space<vmem>>, vector<4x512xf32>,
    %c0_158 = arith.constant 0 : index
    %c128_159 = arith.constant 128 : index
    %143 = vector.load %arg14[%c0_158, %c128_159] : memref<4x768xf32, #tpu.memory_space<vmem>>, vector<4x512xf32>
    %c16_160 = arith.constant 16 : index
    %c0_161 = arith.constant 0 : index
    %144 = vector.load %arg15[%c16_160, %c0_161] : memref<36x512xf32, #tpu.memory_space<vmem>>, vector<4x512xf32>
    tpu.vector_store %arg15[%c16_160, %c0_161], %143 {strides = array<i32>} : memref<36x512xf32, #tpu.memory_space<vmem>>, vector<4x512xf32>,
    %c0_162 = arith.constant 0 : index
    %c129_163 = arith.constant 129 : index
    %145 = vector.load %arg14[%c0_162, %c129_163] : memref<4x768xf32, #tpu.memory_space<vmem>>, vector<4x512xf32>
    %c20_164 = arith.constant 20 : index
    %c0_165 = arith.constant 0 : index
    %146 = vector.load %arg15[%c20_164, %c0_165] : memref<36x512xf32, #tpu.memory_space<vmem>>, vector<4x512xf32>
    tpu.vector_store %arg15[%c20_164, %c0_165], %145 {strides = array<i32>} : memref<36x512xf32, #tpu.memory_space<vmem>>, vector<4x512xf32>,
    %c0_166 = arith.constant 0 : index
    %c143_167 = arith.constant 143 : index
    %147 = vector.load %arg14[%c0_166, %c143_167] : memref<4x768xf32, #tpu.memory_space<vmem>>, vector<4x512xf32>
    %c24_168 = arith.constant 24 : index
    %c0_169 = arith.constant 0 : index
    %148 = vector.load %arg15[%c24_168, %c0_169] : memref<36x512xf32, #tpu.memory_space<vmem>>, vector<4x512xf32>
    tpu.vector_store %arg15[%c24_168, %c0_169], %147 {strides = array<i32>} : memref<36x512xf32, #tpu.memory_space<vmem>>, vector<4x512xf32>,
    %c0_170 = arith.constant 0 : index
    %c144_171 = arith.constant 144 : index
    %149 = vector.load %arg14[%c0_170, %c144_171] : memref<4x768xf32, #tpu.memory_space<vmem>>, vector<4x512xf32>
    %c28_172 = arith.constant 28 : index
    %c0_173 = arith.constant 0 : index
    %150 = vector.load %arg15[%c28_172, %c0_173] : memref<36x512xf32, #tpu.memory_space<vmem>>, vector<4x512xf32>
    tpu.vector_store %arg15[%c28_172, %c0_173], %149 {strides = array<i32>} : memref<36x512xf32, #tpu.memory_space<vmem>>, vector<4x512xf32>,
    %c0_174 = arith.constant 0 : index
    %c145_175 = arith.constant 145 : index
    %151 = vector.load %arg14[%c0_174, %c145_175] : memref<4x768xf32, #tpu.memory_space<vmem>>, vector<4x512xf32>
    %c32_176 = arith.constant 32 : index
    %c0_177 = arith.constant 0 : index
    %152 = vector.load %arg15[%c32_176, %c0_177] : memref<36x512xf32, #tpu.memory_space<vmem>>, vector<4x512xf32>
    tpu.vector_store %arg15[%c32_176, %c0_177], %151 {strides = array<i32>} : memref<36x512xf32, #tpu.memory_space<vmem>>, vector<4x512xf32>,
    %c0_178 = arith.constant 0 : index
    %c0_179 = arith.constant 0 : index
    %153 = vector.load %arg15[%c0_178, %c0_179] : memref<36x512xf32, #tpu.memory_space<vmem>>, vector<36x512xf32>
    %cst_180 = arith.constant 0.000000e+00 : f32
    %154 = vector.broadcast %cst_180 : f32 to vector<36x512xf32>
    %155 = arith.select %2, %153, %154 : vector<36x512xi1>, vector<36x512xf32>
    %cst_181 = arith.constant dense<0.000000e+00> : vector<8x512xf32>
    %156 = tpu.matmul %132, %155, %cst_181 {dimension_numbers = #tpu.dot_dimension_numbers<[1], [0], [0], [1], [0, 0, 1, 1], [], []>} : vector<8x36xf32>, vector<36x512xf32>, vector<8x512xf32> -> vector<8x512xf32>
    %157 = vector.broadcast %133 : vector<8x1xf32> to vector<8x512xf32>
    %158 = arith.addf %156, %157 : vector<8x512xf32>
    %c0_182 = arith.constant 0 : index
    %c0_183 = arith.constant 0 : index
    %159 = vector.load %arg11[%c0_182, %c0_183] : memref<8x1xf32, #tpu.memory_space<vmem>>, vector<8x1xf32>
    %c0_184 = arith.constant 0 : index
    %c0_185 = arith.constant 0 : index
    %160 = vector.load %arg12[%c0_184, %c0_185] : memref<8x1xf32, #tpu.memory_space<vmem>>, vector<8x1xf32>
    %cst_186 = arith.constant dense<0.000000e+00> : vector<8xf32>
    %161 = vector.multi_reduction <add>, %158, %cst_186 [1] : vector<8x512xf32> to vector<8xf32>
    %162 = vector.shape_cast %161 : vector<8xf32> to vector<8x1xf32>
    %cst_187 = arith.constant 0.001953125 : f32
    %163 = vector.broadcast %cst_187 : f32 to vector<8x1xf32>
    %164 = arith.mulf %162, %163 : vector<8x1xf32>
    %165 = arith.mulf %158, %158 : vector<8x512xf32>
    %cst_188 = arith.constant dense<0.000000e+00> : vector<8xf32>
    %166 = vector.multi_reduction <add>, %165, %cst_188 [1] : vector<8x512xf32> to vector<8xf32>
    %167 = vector.shape_cast %166 : vector<8xf32> to vector<8x1xf32>
    %cst_189 = arith.constant 0.001953125 : f32
    %168 = vector.broadcast %cst_189 : f32 to vector<8x1xf32>
    %169 = arith.mulf %167, %168 : vector<8x1xf32>
    %170 = arith.mulf %164, %164 : vector<8x1xf32>
    %171 = arith.subf %169, %170 : vector<8x1xf32>
    %cst_190 = arith.constant 9.99999974E-6 : f32
    %172 = vector.broadcast %cst_190 : f32 to vector<8x1xf32>
    %173 = arith.addf %171, %172 : vector<8x1xf32>
    %174 = math.rsqrt %173 : vector<8x1xf32>
    %175 = arith.mulf %159, %174 : vector<8x1xf32>
    %176 = arith.mulf %164, %175 : vector<8x1xf32>
    %177 = arith.subf %160, %176 : vector<8x1xf32>
    %178 = vector.broadcast %175 : vector<8x1xf32> to vector<8x512xf32>
    %179 = arith.mulf %158, %178 : vector<8x512xf32>
    %180 = vector.broadcast %177 : vector<8x1xf32> to vector<8x512xf32>
    %181 = arith.addf %179, %180 : vector<8x512xf32>
    %cst_191 = arith.constant 0.000000e+00 : f32
    %182 = vector.broadcast %cst_191 : f32 to vector<8x512xf32>
    %183 = arith.maximumf %181, %182 : vector<8x512xf32>
    %c0_192 = arith.constant 0 : index
    %c0_193 = arith.constant 0 : index
    %184 = vector.load %arg13[%c0_192, %c0_193] : memref<8x512xf32, #tpu.memory_space<vmem>>, vector<8x512xf32>
    tpu.vector_store %arg13[%c0_192, %c0_193], %183 {strides = array<i32>} : memref<8x512xf32, #tpu.memory_space<vmem>>, vector<8x512xf32>,
    return
  }
  func.func @transform_0(%arg0: i32) -> (i32, i32) {
    %c0_i32 = arith.constant 0 : i32
    %c0_i32_0 = arith.constant 0 : i32
    %c0_i32_1 = arith.constant 0 : i32
    return %c0_i32, %c0_i32_0 : i32, i32
  }
  func.func @transform_1(%arg0: i32) -> (i32, i32) {
    %c0_i32 = arith.constant 0 : i32
    %c0_i32_0 = arith.constant 0 : i32
    %c0_i32_1 = arith.constant 0 : i32
    return %c0_i32, %c0_i32_0 : i32, i32
  }
  func.func @transform_2(%arg0: i32) -> (i32, i32) {
    %c0_i32 = arith.constant 0 : i32
    %c0_i32_0 = arith.constant 0 : i32
    %c0_i32_1 = arith.constant 0 : i32
    return %c0_i32, %c0_i32_0 : i32, i32
  }
  func.func @transform_3(%arg0: i32) -> (i32, i32) {
    %c0_i32 = arith.constant 0 : i32
    %c0_i32_0 = arith.constant 0 : i32
    %c0_i32_1 = arith.constant 0 : i32
    return %c0_i32, %c0_i32_0 : i32, i32
  }
  func.func @transform_4(%arg0: i32) -> (i32, i32) {
    %c0_i32 = arith.constant 0 : i32
    %c0_i32_0 = arith.constant 0 : i32
    %c0_i32_1 = arith.constant 0 : i32
    return %c0_i32, %c0_i32_0 : i32, i32
  }
  func.func @transform_5(%arg0: i32) -> (i32, i32) {
    %c0_i32 = arith.constant 0 : i32
    %c0_i32_0 = arith.constant 0 : i32
    %c0_i32_1 = arith.constant 0 : i32
    return %c0_i32, %c0_i32_0 : i32, i32
  }
  func.func @transform_6(%arg0: i32) -> (i32, i32) {
    %c0_i32 = arith.constant 0 : i32
    %c0_i32_0 = arith.constant 0 : i32
    %c0_i32_1 = arith.constant 0 : i32
    return %c0_i32, %c0_i32_0 : i32, i32
  }
  func.func @transform_7(%arg0: i32) -> (i32, i32) {
    %c0_i32 = arith.constant 0 : i32
    %c0_i32_0 = arith.constant 0 : i32
    %c0_i32_1 = arith.constant 0 : i32
    return %c0_i32, %c0_i32_0 : i32, i32
  }
  func.func @transform_8(%arg0: i32) -> (i32, i32) {
    %c0_i32 = arith.constant 0 : i32
    %c0_i32_0 = arith.constant 0 : i32
    %c0_i32_1 = arith.constant 0 : i32
    return %c0_i32, %c0_i32_0 : i32, i32
  }
  func.func @transform_9(%arg0: i32) -> (i32, i32) {
    %c0_i32 = arith.constant 0 : i32
    %c0_i32_0 = arith.constant 0 : i32
    %c0_i32_1 = arith.constant 0 : i32
    return %c0_i32, %c0_i32_0 : i32, i32
  }
  func.func @transform_10(%arg0: i32) -> (i32, i32) {
    %c0_i32 = arith.constant 0 : i32
    %c0_i32_0 = arith.constant 0 : i32
    %c0_i32_1 = arith.constant 0 : i32
    return %c0_i32, %c0_i32_0 : i32, i32
  }
  func.func @transform_11(%arg0: i32) -> (i32, i32) {
    %c0_i32 = arith.constant 0 : i32
    %c0_i32_0 = arith.constant 0 : i32
    %c0_i32_1 = arith.constant 0 : i32
    return %c0_i32, %c0_i32_0 : i32, i32
  }
  func.func @transform_12(%arg0: i32) -> (i32, i32) {
    %c0_i32 = arith.constant 0 : i32
    %c0_i32_0 = arith.constant 0 : i32
    %c0_i32_1 = arith.constant 0 : i32
    return %c0_i32, %c0_i32_0 : i32, i32
  }
}

</mosaic_0001>

<bundles_post_ra>
// kernel: tpu_custom_call.1
= control target key start
LH: loop header
LB: loop body
LE: loop exit
PB: predicated region body
PF: predicated region fallthrough
CT: control target
= control target key end

     0   :  { %17 = vsyncpa [#allocation5], 0  ;;  %s3204_s0 = inlined_call_operand.vmem [shape: f32[4,512], index: 0, kind: input, shape index: {}]   ;;  %s3205_s1 = inlined_call_operand.hbm [shape: f32[36,512], index: 1, kind: input, shape index: {}]   ;;  %s3206_s2 = inlined_call_operand.vmem [shape: f32[4,36], index: 2, kind: input, shape index: {}]   ;;  %s3207_s3 = inlined_call_operand.vmem [shape: f32[4,1], index: 3, kind: input, shape index: {}]   ;;  %s3208_s4 = inlined_call_operand.vmem [shape: f32[4,1], index: 4, kind: input, shape index: {}]   ;;  %s3209_s5 = inlined_call_operand.vmem [shape: f32[4,1], index: 5, kind: input, shape index: {}]   ;;  %s3210_s6 = inlined_call_operand.vmem [shape: f32[4,36], index: 6, kind: input, shape index: {}]   ;;  %s3211_s7 = inlined_call_operand.vmem [shape: f32[4,1], index: 7, kind: input, shape index: {}]   ;;  %s3212_s8 = inlined_call_operand.vmem [shape: f32[8,36], index: 8, kind: input, shape index: {}]   ;;  %s3213_s9 = inlined_call_operand.vmem [shape: f32[8,1], index: 9, kind: input, shape index: {}]   ;;  %s3214_s10 = inlined_call_operand.vmem [shape: f32[8,1], index: 10, kind: input, shape index: {}]   ;;  %s3215_s11 = inlined_call_operand.vmem [shape: f32[8,1], index: 11, kind: input, shape index: {}]   ;;  %s3216_s12 = inlined_call_operand.hbm [shape: f32[8,512], index: 12, kind: output, shape index: {}]  }
   0x1   :  { %18 = vsyncpa [#allocation6], 0  ;;  %s2346_s21 = smov [#allocation4]  }
   0x2   :  { %s26_s22 = sshll.u32 %s2346_s21, 4  ;;  %s27_s22 = int_to_ptr.vmem [resolvable:$true] %s26_s22 }
   0x3   :  { %s2310_s23 = scalar_lea.vmem %s27_s22, 2560  ;;  %p2315_p1 = scmp.lt.s32.totalorder %s27_s22, %s27_s22 }
   0x4   :  { %p2311_p0 = scmp.ne.s32.totalorder %s27_s22, %s2310_s23  ;;  %p2316_p2 = scmp.lt.s32.totalorder %s2310_s23, %s2310_s23 }
   0x6   :  { %p2317_p3 = por %p2316_p2, %p2315_p1 }
   0x8   :  { %p2318_p4 = pnand %p2317_p3, %p2311_p0 }
   0xa   :  { %2321 = shalt.err (!%p2318_p4)
}
   0xb   :  { %s2347_s24 = smov 512   ;;  %s2348_s25 = smov 32  }
   0xc   :  { %32 = dma.hbm_to_vmem [thread:$0]  %s3205_s1, 2560, %s27_s22, [#allocation5], %s2347_s24, %s2347_s24, %s2348_s25  }
   0xd   :  { %2342 = dma.done.wait [#allocation5], 2560  }
   0xe   :  { %2343 = vsyncadd [#allocation5], 4294964736  ;;  %v2431_v0 = vld [vmem:[%s3204_s0 + $0x8] sm:$0xff]  ;;  %v2436_v1 = vld [vmem:[%s3204_s0] sm:$0xff]  ;;  %s2349_s14 = smov 111   ;;  %s2350_s0 = smov 113  }
   0xf   :  { %103 = vst [vmem:[#allocation2 + $0xc] sm:$0xff] %v2431_v0  ;;  %349 = vrot.lane.b32.xlu0 %v2431_v0, %s2349_s14  ;;  %102 = vst [vmem:[#allocation2 + $0x4] sm:$0xff] %v2436_v1  ;;  %345 = vrot.lane.b32.xlu1 %v2436_v1, %s2349_s14  ;;  %v343_v2 = vcombine.high %v2436_v1, %v2436_v1  ;;  %v344_v3 = vcombine.high %v2431_v0, %v2431_v0  ;;  %s2351_s1 = smov 112   ;;  %v339_v6 = vld [vmem:[#allocation2 + $0x14] sm:$0xf]  ;;  %s2352_s15 = smov 127  }
  0x10   :  { %238 = vst [vmem:[#allocation3 + $0x8] sm:$0xf] %v2436_v1  ;;  %240 = vst [vmem:[#allocation3 + $0x28] sm:$0xf] %v2431_v0  ;;  %v312_v4 = vcombine.low %v2431_v0, %v2431_v0  ;;  %v311_v5 = vcombine.low %v2436_v1, %v2436_v1  ;;  %s2353_s16 = smov 15   ;;  %s2354_s17 = smov 1  }
  0x11   :  { %239 = vst [vmem:[#allocation3 + $0x88] sm:$0xf] %v343_v2  ;;  %241 = vst [vmem:[#allocation3 + $0x40] sm:$0xf] %v344_v3  ;;  %v276_v11 = vld [vmem:[#allocation2 + $0x14] sm:$0xf] }
  0x12   :  { %v2256_v12 = vld [vmem:[#allocation2 + $0x14] ss:$0 sps:$4 sm:$0xff]   ;;  %s2355_s18 = smov 17   ;;  %s2356_s19 = smov 16   ;;  %v2357_v18 = vmov 0.0   ;;  %v2358_v21 = vmov 0  }
  0x13   :  { %286 = vrot.lane.b32.xlu0 %v2431_v0, %s2350_s0  ;;  %316 = vrot.lane.b32.xlu1 %v2436_v1, %s2351_s1  ;;  %v2258_v14 = vld [vmem:[#allocation2 + $0x14] ss:$0 sps:$4 sm:$0xff]   ;;  %v99_v22 = vld [vmem:[%s3207_s3] sm:$0xf]  ;;  %vm3237_vm0 = vcmask 908288   ;;  %vm324_vm1 = vcmask 916480  }
  0x14   :  { %494 = vmatprep.mubr.f32.mxu0 %v2357_v18  ;;  %565 = vmatprep.mubr.f32.mxu1 %v2357_v18  ;;  %vm292_vm2 = vcmask 924672   ;;  %v2509_v33 = vld [vmem:[#allocation4 + $0x88] sm:$0xf]  ;;  %v2511_v34 = vld [vmem:[#allocation4 + $0x80] sm:$0xf]  ;;  %vm3233_vm5 = vcmask 1043456  }
  0x15   :  { %2248 = vset.pattern.permute.xlu0 %v2358_v21  ;;  %2249 = vset.pattern.permute.xlu1 %v2358_v21  ;;  %vm3234_vm3 = vcmp.ne.f32.partialorder %v2509_v33, 0.0  ;;  %vm3231_vm4 = vcmp.ne.f32.partialorder %v2511_v34, 0.0  ;;  %v2520_v40 = vld [vmem:[#allocation4 + $0x68] sm:$0xff]  ;;  %v2531_v49 = vld [vmem:[#allocation4 + $0x60] sm:$0xff]  ;;  %vm261_vm7 = vcmask 1039360   ;;  %vm3235_vm9 = vcmask 121856  }
  0x16   :  { %v167_v7 = vld [vmem:[#allocation2] sm:$0xff]  ;;  %v168_v9 = vld [vmem:[#allocation2 + $0x8] sm:$0xff]  ;;  %v169_v16 = vld [vmem:[#allocation2 + $0x10] sm:$0xf]  ;;  %vm3221_vm6 = vcmp.ne.f32.partialorder %v2520_v40, 0.0  ;;  %vm3220_vm8 = vcmp.ne.f32.partialorder %v2531_v49, 0.0 }
  0x17   :  { %347 = vrot.lane.b32.xlu0 %v343_v2, %s2349_s14  ;;  %282 = vrot.lane.b32.xlu1 %v2436_v1, %s2350_s0  ;;  %v173_v8 = vcombine.high %v167_v7, %v167_v7  ;;  %v205_v10 = vcombine.low %v168_v9, %v168_v9  ;;  %v204_v13 = vcombine.low %v167_v7, %v167_v7  ;;  %v2260_v17 = vld [vmem:[#allocation2 + $0x10] ss:$0 sps:$4 sm:$0xff]   ;;  %v2544_v58 = vld [vmem:[#allocation4 + $0x90] sm:$0xf]  ;;  %v2552_v62 = vld [vmem:[#allocation4 + $0x48] sm:$0xff]  ;;  %vm3230_vm12 = vcmask 7168  }
  0x18   :  { %v174_v15 = vcombine.high %v168_v9, %v168_v9  ;;  %v106_v19 = vld [vmem:[#allocation2 + $0x10] sm:$0xf]  ;;  %vm3226_vm11 = vcmp.ne.f32.partialorder %v2544_v58, 0.0  ;;  %vm3218_vm13 = vcmp.ne.f32.partialorder %v2552_v62, 0.0 }
  0x19   :  { %v2261_v20 = vld [vmem:[#allocation2 + $0x10] ss:$0 sps:$4 sm:$0xff]  }
  0x1a   :  { %v2539_v54 = vld [vmem:[#allocation4 + $0x98] sm:$0xf] }
  0x1b   :  { %318 = vrot.lane.b32.xlu0 %v312_v4, %s2351_s1  ;;  %284 = vrot.lane.b32.xlu1 %v343_v2, %s2350_s0  ;;  %vm3232_vm10 = vcmp.ne.f32.partialorder %v2539_v54, 0.0 }
  0x1f   :  { %314 = vrot.lane.b32.xlu0 %v311_v5, %s2351_s1  ;;  %351 = vrot.lane.b32.xlu1 %v344_v3, %s2349_s14 }
  0x23   :  { %353 = vrot.lane.b32.xlu0 %v339_v6, %s2349_s14  ;;  %253 = vrot.lane.b32.xlu1 %v2436_v1, %s2352_s15 }
  0x27   :  { %255 = vrot.lane.b32.xlu0 %v312_v4, %s2352_s15  ;;  %251 = vrot.lane.b32.xlu1 %v311_v5, %s2352_s15 }
  0x2b   :  { %179 = vrot.lane.b32.xlu1 %v168_v9, %s2353_s16  ;;  %177 = vrot.lane.b32.xlu0 %v173_v8, %s2353_s16 }
  0x2f   :  { %211 = vrot.lane.b32.xlu1 %v205_v10, %s2354_s17  ;;  %209 = vrot.lane.b32.xlu0 %v167_v7, %s2354_s17 }
  0x33   :  { %290 = vrot.lane.b32.xlu1 %v276_v11, %s2350_s0  ;;  %288 = vrot.lane.b32.xlu0 %v344_v3, %s2350_s0  ;;  %v2556_v3 = vld [vmem:[#allocation4 + $0x40] sm:$0xff] }
  0x34   :  { %vm3217_vm14 = vcmp.ne.f32.partialorder %v2556_v3, 0.0 }
  0x37   :  { %322 = vrot.lane.b32.xlu1 %v2256_v12, %s2351_s1  ;;  %320 = vrot.lane.b32.xlu0 %v2431_v0, %s2351_s1 }
  0x3b   :  { %207 = vrot.lane.b32.xlu1 %v204_v13, %s2354_s17  ;;  %175 = vrot.lane.b32.xlu0 %v167_v7, %s2353_s16 }
  0x3f   :  { %116 = vrot.lane.b32.xlu1 %v168_v9, %s2355_s18  ;;  %114 = vrot.lane.b32.xlu0 %v173_v8, %s2355_s18 }
  0x43   :  { %148 = vrot.lane.b32.xlu1 %v205_v10, %s2356_s19  ;;  %146 = vrot.lane.b32.xlu0 %v167_v7, %s2356_s19 }
  0x47   :  { %259 = vrot.lane.b32.xlu1 %v2258_v14, %s2352_s15  ;;  %257 = vrot.lane.b32.xlu0 %v2431_v0, %s2352_s15 }
  0x4b   :  { %144 = vrot.lane.b32.xlu1 %v204_v13, %s2356_s19  ;;  %112 = vrot.lane.b32.xlu0 %v167_v7, %s2355_s18  ;;  %v2574_v13 = vld [vmem:[#allocation4 + $0x28] sm:$0xff] }
  0x4c   :  { %vm3219_vm15 = vcmp.ne.f32.partialorder %v2574_v13, 0.0 }
  0x4f   :  { %183 = vrot.lane.b32.xlu1 %v169_v16, %s2353_s16  ;;  %181 = vrot.lane.b32.xlu0 %v174_v15, %s2353_s16 }
  0x53   :  { %215 = vrot.lane.b32.xlu1 %v2260_v17, %s2354_s17  ;;  %213 = vrot.lane.b32.xlu0 %v168_v9, %s2354_s17 }
  0x57   :  { %120 = vrot.lane.b32.xlu1 %v106_v19, %s2355_s18  ;;  %118 = vrot.lane.b32.xlu0 %v174_v15, %s2355_s18 }
  0x5b   :  { %152 = vrot.lane.b32.xlu1 %v2261_v20, %s2356_s19  ;;  %150 = vrot.lane.b32.xlu0 %v168_v9, %s2356_s19 }
  0x5f   :  { %410 = vperm.xlu0 %2248, %v99_v22  }
  0x81   :  { %v350_v23 = vpop.permute.xlu0 %349  ;;  %v346_v24 = vpop.permute.xlu1 %345 }
  0x85   :  { %v2503_v25 = vpop.permute.xlu0 %286  ;;  %v317_v26 = vpop.permute.xlu1 %316 }
  0x89   :  { %v348_v27 = vpop.permute.xlu0 %347  ;;  %v283_v28 = vpop.permute.xlu1 %282 }
  0x8a   :  { %v356_v29 = vsel %vm3237_vm0, %v346_v24, %v348_v27  ;;  %v357_v30 = vsel %vm3237_vm0, %v348_v27, %v350_v23  ;;  %v2585_v24 = vld [vmem:[#allocation4 + $0x78] sm:$0xff]  ;;  %v2589_v27 = vld [vmem:[#allocation4 + $0x70] sm:$0xff] }
  0x8b   :  { %364 = vst [vmem:[#allocation3 + $0x20] sm:$0xf] %v356_v29  ;;  %365 = vst [vmem:[#allocation3 + $0x48] sm:$0xf] %v357_v30  ;;  %v2595_v30 = vld [vmem:[#allocation4 + $0x20] sm:$0xff] }
  0x8d   :  { %v2507_v31 = vpop.permute.xlu0 %318  ;;  %v285_v32 = vpop.permute.xlu1 %284 }
  0x8e   :  { %v326_v35 = vsel %vm324_vm1, %v317_v26, %v2507_v31  ;;  %v293_v36 = vsel %vm292_vm2, %v283_v28, %v285_v32  ;;  %v294_v37 = vsel %vm292_vm2, %v285_v32, %v2503_v25 }
  0x8f   :  { %334 = vst [vmem:[#allocation3 + $0x10] sm:$0xf0] %v326_v35  ;;  %301 = vst [vmem:[#allocation3 + $0x58] sm:$0xf] %v293_v36 }
  0x90   :  { %302 = vst [vmem:[#allocation3 + $0x10] sm:$0xf] %v294_v37 }
  0x91   :  { %v315_v38 = vpop.permute.xlu0 %314  ;;  %v352_v39 = vpop.permute.xlu1 %351 }
  0x92   :  { %v325_v41 = vsel %vm324_vm1, %v315_v38, %v317_v26  ;;  %v358_v42 = vsel %vm3237_vm0, %v350_v23, %v352_v39  ;;  %v385_v43 = vld [vmem:[#allocation3 + $0x48] sm:$0xf]  ;;  %v384_v44 = vld [vmem:[#allocation3 + $0x20] sm:$0xf] }
  0x93   :  { %333 = vst [vmem:[#allocation3 + $0x58] sm:$0xf0] %v325_v41  ;;  %366 = vst [vmem:[#allocation3 + $0x70] sm:$0xf] %v358_v42  ;;  %v405_v45 = vsel %vm3234_vm3, %v385_v43, 0.0  ;;  %v404_v46 = vsel %vm3231_vm4, %v384_v44, 0.0 }
  0x94   :  { %2146 = vmatprep.subr.msk.mxu0 %vm3233_vm5, %v405_v45  ;;  %v2610_v43 = vld [vmem:[#allocation4 + $0x8] sm:$0xff] }
  0x95   :  { %v354_v47 = vpop.permute.xlu0 %353  ;;  %v254_v48 = vpop.permute.xlu1 %253  ;;  %2147 = vmatpush1.msk.msra.mxu0 %vm3233_vm5, %v404_v46 }
  0x96   :  { %v359_v50 = vsel %vm3237_vm0, %v352_v39, %v354_v47 }
  0x97   :  { %v381_v51 = vld [vmem:[#allocation3 + $0x10] sm:$0xff]  ;;  %367 = vst [vmem:[#allocation3 + $0x90] sm:$0xf] %v359_v50 }
  0x98   :  { %2148 = vmatprep.subr.msk.mxu0 %vm3221_vm6, %v381_v51  ;;  %vm3223_vm6 = vcmp.ne.f32.partialorder %v2595_v30, 0.0 }
  0x99   :  { %v2537_v52 = vpop.permute.xlu0 %255  ;;  %v252_v53 = vpop.permute.xlu1 %251 }
  0x9a   :  { %v263_v55 = vsel %vm261_vm7, %v254_v48, %v2537_v52  ;;  %v262_v56 = vsel %vm261_vm7, %v252_v53, %v254_v48  ;;  %v380_v57 = vld [vmem:[#allocation3 + $0x58] sm:$0xff]  ;;  %v386_v61 = vld [vmem:[#allocation3 + $0x70] sm:$0xf] }
  0x9b   :  { %271 = vst [vmem:[#allocation3 + $0x88] sm:$0xf0] %v263_v55  ;;  %270 = vst [vmem:[#allocation3 + $0x8] sm:$0xf0] %v262_v56  ;;  %2149 = vmatpush1.msk.msra.mxu0 %vm3220_vm8, %v380_v57  ;;  %v406_v5 = vsel %vm3226_vm11, %v386_v61, 0.0  ;;  %vm154_vm8 = vcmask 130048  }
  0x9c   :  { %v2616_v48 = vld [vmem:[#allocation4 + $0x58] sm:$0xff]  ;;  %v2620_v55 = vld [vmem:[#allocation4 + $0x50] sm:$0xff]  ;;  %v2626_v57 = vld [vmem:[#allocation4] sm:$0xff]  ;;  %vm413_vm11 = vcmask 293888  }
  0x9d   :  { %v2549_v59 = vpop.permute.xlu1 %179  ;;  %v178_v60 = vpop.permute.xlu0 %177 }
  0x9e   :  { %v187_v63 = vsel %vm3235_vm9, %v178_v60, %v2549_v59  ;;  %v387_v2 = vld [vmem:[#allocation3 + $0x90] sm:$0xf] }
  0x9f   :  { %195 = vst [vmem:[#allocation3 + $0x68] sm:$0xf] %v187_v63  ;;  %v407_v4 = vsel %vm3232_vm10, %v387_v2, 0.0 }
  0xa0   :  { %2157 = vmatprep.subr.msk.mxu1 %vm3233_vm5, %v407_v4 }
  0xa1   :  { %v2564_v6 = vpop.permute.xlu1 %211  ;;  %v210_v7 = vpop.permute.xlu0 %209  ;;  %2158 = vmatpush1.msk.msra.mxu1 %vm3233_vm5, %v406_v5 }
  0xa2   :  { %v219_v8 = vsel %vm3230_vm12, %v210_v7, %v2564_v6  ;;  %v377_v9 = vld [vmem:[#allocation3 + $0x88] sm:$0xff] }
  0xa3   :  { %v376_v10 = vld [vmem:[#allocation3 + $0x8] sm:$0xff]  ;;  %227 = vst [vmem:[#allocation3 + $0x68] sm:$0xf0] %v219_v8  ;;  %2150 = vmatprep.subr.msk.mxu0 %vm3218_vm13, %v377_v9  ;;  %vm3224_vm13 = vcmp.ne.f32.partialorder %v2585_v24, 0.0 }
  0xa4   :  { %2151 = vmatpush1.msk.msra.mxu0 %vm3217_vm14, %v376_v10  ;;  %vm3236_vm14 = vcmask 138240  }
  0xa5   :  { %v291_v11 = vpop.permute.xlu1 %290  ;;  %v289_v12 = vpop.permute.xlu0 %288 }
  0xa6   :  { %v295_v14 = vsel %vm292_vm2, %v2503_v25, %v289_v12  ;;  %v296_v15 = vsel %vm292_vm2, %v289_v12, %v291_v11  ;;  %v2645_v12 = vld [vmem:[#allocation4 + $0x38] sm:$0xff] }
  0xa7   :  { %303 = vst [vmem:[#allocation3 + $0x98] sm:$0xf] %v295_v14  ;;  %304 = vst [vmem:[#allocation3 + $0x60] sm:$0xf] %v296_v15  ;;  %v2651_v15 = vld [vmem:[#allocation4 + $0x30] sm:$0xff] }
  0xa9   :  { %v323_v16 = vpop.permute.xlu1 %322  ;;  %v321_v17 = vpop.permute.xlu0 %320 }
  0xaa   :  { %v327_v19 = vsel %vm324_vm1, %v2507_v31, %v321_v17  ;;  %v328_v20 = vsel %vm324_vm1, %v321_v17, %v323_v16  ;;  %v373_v21 = vld [vmem:[#allocation3 + $0x68] sm:$0xff] }
  0xab   :  { %335 = vst [vmem:[#allocation3 + $0x98] sm:$0xf0] %v327_v19  ;;  %336 = vst [vmem:[#allocation3 + $0x60] sm:$0xf0] %v328_v20  ;;  %2152 = vmatprep.subr.msk.mxu0 %vm3219_vm15, %v373_v21  ;;  %vm3222_vm15 = vcmp.ne.f32.partialorder %v2589_v27, 0.0 }
  0xad   :  { %v208_v22 = vpop.permute.xlu1 %207  ;;  %v176_v23 = vpop.permute.xlu0 %175 }
  0xae   :  { %v218_v25 = vsel %vm3230_vm12, %v208_v22, %v210_v7  ;;  %v186_v26 = vsel %vm3235_vm9, %v176_v23, %v178_v60  ;;  %v2662_v23 = vld [vmem:[#allocation4 + $0x18] sm:$0xff] }
  0xaf   :  { %226 = vst [vmem:[#allocation3 + $0x30] sm:$0xf0] %v218_v25  ;;  %194 = vst [vmem:[#allocation3 + $0x30] sm:$0xf] %v186_v26  ;;  %v2664_v25 = vld [vmem:[#allocation4 + $0x10] sm:$0xff] }
  0xb1   :  { %v2592_v28 = vpop.permute.xlu1 %116  ;;  %v115_v29 = vpop.permute.xlu0 %114 }
  0xb2   :  { %v124_v31 = vsel %vm3236_vm14, %v115_v29, %v2592_v28  ;;  %v383_v32 = vld [vmem:[#allocation3 + $0x60] sm:$0xff]  ;;  %v382_v35 = vld [vmem:[#allocation3 + $0x98] sm:$0xff] }
  0xb3   :  { %132 = vst [vmem:[#allocation3 + $0x38] sm:$0xf] %v124_v31  ;;  %2159 = vmatprep.subr.msk.mxu1 %vm3224_vm13, %v383_v32  ;;  %vm3227_vm13 = vcmp.ne.f32.partialorder %v2620_v55, 0.0 }
  0xb4   :  { %2160 = vmatpush1.msk.msra.mxu1 %vm3222_vm15, %v382_v35  ;;  %vm3225_vm15 = vcmp.ne.f32.partialorder %v2610_v43, 0.0 }
  0xb5   :  { %v2604_v36 = vpop.permute.xlu1 %148  ;;  %v147_v37 = vpop.permute.xlu0 %146 }
  0xb6   :  { %v156_v38 = vsel %vm154_vm8, %v147_v37, %v2604_v36  ;;  %v372_v39 = vld [vmem:[#allocation3 + $0x30] sm:$0xff] }
  0xb7   :  { %164 = vst [vmem:[#allocation3 + $0x38] sm:$0xf0] %v156_v38  ;;  %2153 = vmatpush1.msk.msra.mxu0 %vm3223_vm6, %v372_v39  ;;  %vm3229_vm6 = vcmp.ne.f32.partialorder %v2616_v48, 0.0 }
  0xb9   :  { %v260_v41 = vpop.permute.xlu1 %259  ;;  %v258_v42 = vpop.permute.xlu0 %257 }
  0xba   :  { %v264_v44 = vsel %vm261_vm7, %v2537_v52, %v258_v42  ;;  %v265_v45 = vsel %vm261_vm7, %v258_v42, %v260_v41 }
  0xbb   :  { %272 = vst [vmem:[#allocation3 + $0x28] sm:$0xf0] %v264_v44  ;;  %273 = vst [vmem:[#allocation3 + $0x40] sm:$0xf0] %v265_v45 }
  0xbd   :  { %v145_v46 = vpop.permute.xlu1 %144  ;;  %v113_v47 = vpop.permute.xlu0 %112 }
  0xbe   :  { %v155_v50 = vsel %vm154_vm8, %v145_v46, %v147_v37  ;;  %v123_v51 = vsel %vm3236_vm14, %v113_v47, %v115_v29  ;;  %v369_v53 = vld [vmem:[#allocation3 + $0x38] sm:$0xff] }
  0xbf   :  { %163 = vst [vmem:[#allocation3] sm:$0xf0] %v155_v50  ;;  %131 = vst [vmem:[#allocation3] sm:$0xf] %v123_v51  ;;  %2154 = vmatprep.subr.msk.mxu0 %vm3225_vm15, %v369_v53  ;;  %vm3228_vm15 = vcmp.ne.f32.partialorder %v2626_v57, 0.0 }
  0xc1   :  { %v184_v52 = vpop.permute.xlu1 %183  ;;  %v182_v56 = vpop.permute.xlu0 %181 }
  0xc2   :  { %v188_v60 = vsel %vm3235_vm9, %v2549_v59, %v182_v56  ;;  %v189_v61 = vsel %vm3235_vm9, %v182_v56, %v184_v52  ;;  %v379_v63 = vld [vmem:[#allocation3 + $0x40] sm:$0xff]  ;;  %v378_v2 = vld [vmem:[#allocation3 + $0x28] sm:$0xff] }
  0xc3   :  { %196 = vst [vmem:[#allocation3 + $0x78] sm:$0xf] %v188_v60  ;;  %197 = vst [vmem:[#allocation3 + $0x80] sm:$0xf] %v189_v61  ;;  %2161 = vmatprep.subr.msk.mxu1 %vm3229_vm6, %v379_v63  ;;  %v98_v59 = vld [vmem:[%s3206_s2] sm:$0xf] }
  0xc4   :  { %2162 = vmatpush1.msk.msra.mxu1 %vm3227_vm13, %v378_v2  ;;  %vm83_vm13 = vcmp.ne.f32.partialorder %v2645_v12, 0.0  ;;  %vm79_vm6 = vcmp.ne.f32.partialorder %v2662_v23, 0.0 }
  0xc5   :  { %v216_v4 = vpop.permute.xlu1 %215  ;;  %v214_v5 = vpop.permute.xlu0 %213 }
  0xc6   :  { %v220_v7 = vsel %vm3230_vm12, %v2564_v6, %v214_v5  ;;  %v221_v8 = vsel %vm3230_vm12, %v214_v5, %v216_v4  ;;  %v368_v9 = vld [vmem:[#allocation3] sm:$0xff]  ;;  %vm78_vm12 = vcmp.ne.f32.partialorder %v2664_v25, 0.0 }
  0xc7   :  { %228 = vst [vmem:[#allocation3 + $0x78] sm:$0xf0] %v220_v7  ;;  %229 = vst [vmem:[#allocation3 + $0x80] sm:$0xf0] %v221_v8  ;;  %2155 = vmatpush1.msk.msra.mxu0 %vm3228_vm15, %v368_v9  ;;  %vm82_vm15 = vcmp.ne.f32.partialorder %v2651_v15, 0.0 }
  0xc8   :  { %2156 = vmatmul.mubr.msk.f32.vlgmr.msra.gmra.mxu0 %vm413_vm11, %v98_v59 }
  0xc9   :  { %v121_v10 = vpop.permute.xlu1 %120  ;;  %v119_v11 = vpop.permute.xlu0 %118  ;;  %1017 = vmatprep.mubr.f32.mxu0 %v2357_v18 }
  0xca   :  { %v125_v14 = vsel %vm3236_vm14, %v2592_v28, %v119_v11  ;;  %v126_v6 = vsel %vm3236_vm14, %v119_v11, %v121_v10 }
  0xcb   :  { %133 = vst [vmem:[#allocation3 + $0x50] sm:$0xf] %v125_v14  ;;  %134 = vst [vmem:[#allocation3 + $0x18] sm:$0xf] %v126_v6 }
  0xcd   :  { %v153_v16 = vpop.permute.xlu1 %152  ;;  %v151_v17 = vpop.permute.xlu0 %150 }
  0xce   :  { %v157_v19 = vsel %vm154_vm8, %v2604_v36, %v151_v17  ;;  %v158_v20 = vsel %vm154_vm8, %v151_v17, %v153_v16  ;;  %v375_v21 = vld [vmem:[#allocation3 + $0x80] sm:$0xff]  ;;  %v374_v22 = vld [vmem:[#allocation3 + $0x78] sm:$0xff]  ;;  %v2691_v17 = vld [vmem:[%s3208_s4] sm:$0xf] }
  0xcf   :  { %165 = vst [vmem:[#allocation3 + $0x50] sm:$0xf0] %v157_v19  ;;  %166 = vst [vmem:[#allocation3 + $0x18] sm:$0xf0] %v158_v20  ;;  %2163 = vmatprep.subr.msk.mxu1 %vm83_vm13, %v375_v21  ;;  %v101_v21 = vld [vmem:[%s3209_s5] sm:$0xf] }
  0xd0   :  { %2164 = vmatpush1.msk.msra.mxu1 %vm82_vm15, %v374_v22 }
  0xd6   :  { %v371_v26 = vld [vmem:[#allocation3 + $0x18] sm:$0xff]  ;;  %v370_v28 = vld [vmem:[#allocation3 + $0x50] sm:$0xff] }
  0xd7   :  { %2165 = vmatprep.subr.msk.mxu1 %vm79_vm6, %v371_v26  ;;  %v2262_v26 = vld [vmem:[#allocation2 + $0x14] ss:$0 sps:$4 sm:$0xff]  }
  0xd8   :  { %2166 = vmatpush1.msk.msra.mxu1 %vm78_vm12, %v370_v28 }
  0xd9   :  { %2167 = vmatmul.mubr.msk.f32.vlgmr.msra.gmra.mxu1 %vm413_vm11, %v98_v59 }
  0xda   :  { %1088 = vmatprep.mubr.f32.mxu1 %v2357_v18  ;;  %v2674_v31 = vpop.permute.xlu0 %410 }
 0x188   :  { %v496_v29 = vpop.f32.mrf.mxu0 }
 0x189   :  { %v497_v36 = vadd.f32 %v496_v29, %v2674_v31  ;;  %v865_v29 = vld [vmem:[#allocation2 + $0x14] sm:$0xf] }
 0x18a   :  { %v498_v32 = vpop.f32.mrf.mxu0 }
 0x18b   :  { %v499_v35 = vadd.f32 %v498_v32, %v2674_v31  ;;  %v582_v38 = vmul.f32 %v497_v36, %v497_v36  ;;  %v572_v41 = vsel %vm3233_vm5, %v497_v36, 0.0  ;;  %v804_v32 = vld [vmem:[#allocation2 + $0x14] sm:$0xf] }
 0x18d   :  { %v583_v37 = vmul.f32 %v499_v35, %v499_v35  ;;  %v573_v39 = vsel %vm3233_vm5, %v499_v35, 0.0  ;;  %v586_v45 = vsel %vm3233_vm5, %v582_v38, 0.0 }
 0x18e   :  { %v574_v50 = vadd.f32 %v573_v39, %v572_v41 }
 0x18f   :  { %v587_v46 = vsel %vm3233_vm5, %v583_v37, 0.0  ;;  %v2263_v37 = vld [vmem:[#allocation2 + $0x14] ss:$0 sps:$4 sm:$0xff]  }
 0x190   :  { %v588_v60 = vadd.f32 %v587_v46, %v586_v45 }
 0x199   :  { %v567_v42 = vpop.f32.mrf.mxu1 }
 0x19a   :  { %v568_v44 = vadd.f32 %v567_v42, %v2674_v31 }
 0x19b   :  { %v569_v47 = vpop.f32.mrf.mxu1 }
 0x19c   :  { %v584_v51 = vmul.f32 %v568_v44, %v568_v44  ;;  %v570_v53 = vadd.f32 %v569_v47, %v2674_v31  ;;  %v575_v52 = vsel %vm3233_vm5, %v568_v44, 0.0 }
 0x19d   :  { %v576_v56 = vadd.f32 %v575_v52, %v574_v50 }
 0x19e   :  { %v577_v61 = vsel %vm3233_vm5, %v570_v53, 0.0  ;;  %v585_v63 = vmul.f32 %v570_v53, %v570_v53  ;;  %v589_v2 = vsel %vm3233_vm5, %v584_v51, 0.0 }
 0x19f   :  { %v578_v4 = vadd.f32 %v577_v61, %v576_v56  ;;  %v590_v5 = vadd.f32 %v589_v2, %v588_v60 }
 0x1a0   :  { %v591_v59 = vsel %vm3233_vm5, %v585_v63, 0.0 }
 0x1a1   :  { %579 = vadd.xlane.f32.xlu1 %v578_v4  ;;  %v592_v7 = vadd.f32 %v591_v59, %v590_v5 }
 0x1a3   :  { %593 = vadd.xlane.f32.xlu0 %v592_v7 }
 0x22a   :  { %v580_v8 = vpop.xlane.xlu1 %579 }
 0x22b   :  { %v581_v9 = vmul.f32 0.001953125, %v580_v8 }
 0x22c   :  { %v594_v10 = vpop.xlane.xlu0 %593 }
 0x22d   :  { %v596_v11 = vmul.f32 %v581_v9, %v581_v9  ;;  %v595_v14 = vmul.f32 0.001953125, %v594_v10 }
 0x22f   :  { %v597_v6 = vsub.f32 %v595_v14, %v596_v11 }
 0x231   :  { %v598_v16 = vadd.f32 1e-05, %v597_v6  ;;  %v626_v6 = vld [vmem:[%s3211_s7] sm:$0xf] }
 0x233   :  { %2286 = vrsqrt.f32 %v598_v16 }
 0x240   :  { %v2287_v19 = vpop.eup %2286 }
 0x241   :  { %v600_v20 = vmul.f32 %v2287_v19, %v2691_v17 }
 0x243   :  { %605 = vperm.xlu1 %2249, %v600_v20   ;;  %v601_v22 = vmul.f32 %v600_v20, %v581_v9 }
 0x245   :  { %v602_v28 = vsub.f32 %v101_v21, %v601_v22 }
 0x247   :  { %614 = vperm.xlu0 %2248, %v602_v28   ;;  %788 = vrot.lane.b32.xlu1 %v2262_v26, %s2352_s15 }
 0x24b   :  { %879 = vrot.lane.b32.xlu0 %v865_v29, %s2349_s14 }
 0x24f   :  { %818 = vrot.lane.b32.xlu0 %v804_v32, %s2350_s0 }
 0x253   :  { %849 = vrot.lane.b32.xlu0 %v2263_v37, %s2351_s1 }
 0x2be   :  { %v606_v38 = vpop.permute.xlu1 %605 }
 0x2bf   :  { %v608_v39 = vmul.f32 %v606_v38, %v497_v36  ;;  %v609_v41 = vmul.f32 %v606_v38, %v499_v35  ;;  %v610_v42 = vmul.f32 %v606_v38, %v568_v44  ;;  %v611_v45 = vmul.f32 %v606_v38, %v570_v53 }
 0x2c2   :  { %v615_v46 = vpop.permute.xlu0 %614  ;;  %v789_v22 = vpop.permute.xlu1 %788 }
 0x2c3   :  { %v617_v47 = vadd.f32 %v615_v46, %v608_v39  ;;  %v618_v50 = vadd.f32 %v615_v46, %v609_v41  ;;  %v619_v51 = vadd.f32 %v615_v46, %v610_v42  ;;  %v620_v52 = vadd.f32 %v615_v46, %v611_v45 }
 0x2c5   :  { %v621_v56 = vmax.f32 %v617_v47, 0.0  ;;  %v622_v60 = vmax.f32 %v618_v50, 0.0  ;;  %v623_v61 = vmax.f32 %v619_v51, 0.0  ;;  %v624_v63 = vmax.f32 %v620_v52, 0.0 }
 0x2c6   :  { %v880_v20 = vpop.permute.xlu0 %879 }
 0x2c7   :  { %v631_v2 = vcombine.low %v621_v56, %v622_v60  ;;  %v632_v4 = vcombine.low %v623_v61, %v624_v63  ;;  %v2294_v35 = vcombine.low %v622_v60, %v622_v60  ;;  %v2295_v36 = vcombine.low %v624_v63, %v624_v63 }
 0x2c8   :  { %v2296_v59 = vcombine.low %v623_v61, %v623_v61  ;;  %v2297_v8 = vcombine.low %v621_v56, %v621_v56 }
 0x2c9   :  { %635 = vst [vmem:[#allocation2 + $0x4] sm:$0xff] %v631_v2  ;;  %636 = vst [vmem:[#allocation2 + $0xc] sm:$0xff] %v632_v4  ;;  %875 = vrot.lane.b32.xlu1 %v632_v4, %s2349_s14  ;;  %871 = vrot.lane.b32.xlu0 %v631_v2, %s2349_s14 }
 0x2ca   :  { %767 = vst [vmem:[#allocation3 + $0x8] sm:$0xf] %v631_v2  ;;  %769 = vst [vmem:[#allocation3 + $0x28] sm:$0xf] %v632_v4  ;;  %v2740_v21 = vpop.permute.xlu0 %818 }
 0x2cb   :  { %768 = vst [vmem:[#allocation3 + $0x88] sm:$0xf] %v2294_v35  ;;  %770 = vst [vmem:[#allocation3 + $0x40] sm:$0xf] %v2295_v36 }
 0x2cd   :  { %814 = vrot.lane.b32.xlu0 %v632_v4, %s2350_s0  ;;  %843 = vrot.lane.b32.xlu1 %v631_v2, %s2351_s1 }
 0x2ce   :  { %v850_v26 = vpop.permute.xlu0 %849 }
 0x2d0   :  { %v728_v44 = vld [vmem:[#allocation2] sm:$0xff]  ;;  %v699_v53 = vld [vmem:[#allocation2 + $0x8] sm:$0xff]  ;;  %v700_v5 = vld [vmem:[#allocation2 + $0x10] sm:$0xf] }
 0x2d1   :  { %810 = vrot.lane.b32.xlu1 %v631_v2, %s2350_s0  ;;  %739 = vrot.lane.b32.xlu0 %v728_v44, %s2354_s17  ;;  %v639_v7 = vld [vmem:[#allocation2 + $0x10] sm:$0xf]  ;;  %v704_v9 = vcombine.high %v728_v44, %v728_v44  ;;  %v705_v10 = vcombine.high %v699_v53, %v699_v53  ;;  %v735_v11 = vcombine.low %v699_v53, %v699_v53 }
 0x2d2   :  { %v734_v14 = vcombine.low %v728_v44, %v728_v44  ;;  %v2268_v16 = vld [vmem:[#allocation2 + $0x10] ss:$0 sps:$4 sm:$0xff]  }
 0x2d3   :  { %v2269_v19 = vld [vmem:[#allocation2 + $0x10] ss:$0 sps:$4 sm:$0xff]  }
 0x2d5   :  { %782 = vrot.lane.b32.xlu1 %v631_v2, %s2352_s15  ;;  %786 = vrot.lane.b32.xlu0 %v632_v4, %s2352_s15 }
 0x2d9   :  { %847 = vrot.lane.b32.xlu1 %v632_v4, %s2351_s1  ;;  %706 = vrot.lane.b32.xlu0 %v728_v44, %s2353_s16 }
 0x2dd   :  { %710 = vrot.lane.b32.xlu1 %v699_v53, %s2353_s16  ;;  %678 = vrot.lane.b32.xlu0 %v728_v44, %s2356_s19 }
 0x2e1   :  { %743 = vrot.lane.b32.xlu0 %v699_v53, %s2354_s17  ;;  %649 = vrot.lane.b32.xlu1 %v699_v53, %s2355_s18 }
 0x2e5   :  { %714 = vrot.lane.b32.xlu1 %v700_v5, %s2353_s16  ;;  %645 = vrot.lane.b32.xlu0 %v728_v44, %s2355_s18 }
 0x2e9   :  { %653 = vrot.lane.b32.xlu1 %v639_v7, %s2355_s18  ;;  %845 = vrot.lane.b32.xlu0 %v2296_v59, %s2351_s1 }
 0x2ed   :  { %873 = vrot.lane.b32.xlu1 %v2294_v35, %s2349_s14  ;;  %841 = vrot.lane.b32.xlu0 %v2297_v8, %s2351_s1 }
 0x2f1   :  { %877 = vrot.lane.b32.xlu1 %v2295_v36, %s2349_s14  ;;  %784 = vrot.lane.b32.xlu0 %v2296_v59, %s2352_s15 }
 0x2f5   :  { %812 = vrot.lane.b32.xlu1 %v2294_v35, %s2350_s0  ;;  %708 = vrot.lane.b32.xlu0 %v704_v9, %s2353_s16 }
 0x2f9   :  { %816 = vrot.lane.b32.xlu1 %v2295_v36, %s2350_s0  ;;  %647 = vrot.lane.b32.xlu0 %v704_v9, %s2355_s18 }
 0x2fd   :  { %780 = vrot.lane.b32.xlu1 %v2297_v8, %s2352_s15  ;;  %712 = vrot.lane.b32.xlu0 %v705_v10, %s2353_s16 }
 0x301   :  { %741 = vrot.lane.b32.xlu1 %v735_v11, %s2354_s17  ;;  %651 = vrot.lane.b32.xlu0 %v705_v10, %s2355_s18 }
 0x305   :  { %737 = vrot.lane.b32.xlu1 %v734_v14, %s2354_s17  ;;  %682 = vrot.lane.b32.xlu0 %v699_v53, %s2356_s19 }
 0x309   :  { %680 = vrot.lane.b32.xlu1 %v735_v11, %s2356_s19  ;;  %935 = vperm.xlu0 %2248, %v626_v6  }
 0x30d   :  { %745 = vrot.lane.b32.xlu1 %v2268_v16, %s2354_s17 }
 0x311   :  { %676 = vrot.lane.b32.xlu1 %v734_v14, %s2356_s19 }
 0x315   :  { %684 = vrot.lane.b32.xlu1 %v2269_v19, %s2356_s19 }
 0x33b   :  { %v876_v28 = vpop.permute.xlu1 %875  ;;  %v872_v29 = vpop.permute.xlu0 %871 }
 0x33f   :  { %v844_v32 = vpop.permute.xlu1 %843  ;;  %v815_v37 = vpop.permute.xlu0 %814 }
 0x343   :  { %v811_v38 = vpop.permute.xlu1 %810  ;;  %v2742_v39 = vpop.permute.xlu0 %739 }
 0x347   :  { %v2744_v41 = vpop.permute.xlu1 %782  ;;  %v787_v42 = vpop.permute.xlu0 %786 }
 0x348   :  { %v793_v45 = vsel %vm261_vm7, %v787_v42, %v789_v22 }
 0x349   :  { %801 = vst [vmem:[#allocation3 + $0x40] sm:$0xf0] %v793_v45 }
 0x34b   :  { %v848_v46 = vpop.permute.xlu1 %847  ;;  %v707_v47 = vpop.permute.xlu0 %706 }
 0x34c   :  { %v854_v50 = vsel %vm324_vm1, %v848_v46, %v850_v26 }
 0x34d   :  { %862 = vst [vmem:[#allocation3 + $0x60] sm:$0xf0] %v854_v50 }
 0x34f   :  { %v2748_v51 = vpop.permute.xlu1 %710  ;;  %v2750_v52 = vpop.permute.xlu0 %678 }
 0x353   :  { %v2752_v56 = vpop.permute.xlu1 %649  ;;  %v2754_v60 = vpop.permute.xlu0 %743 }
 0x357   :  { %v2756_v61 = vpop.permute.xlu1 %714  ;;  %v646_v63 = vpop.permute.xlu0 %645 }
 0x35b   :  { %v2758_v2 = vpop.permute.xlu1 %653  ;;  %v846_v4 = vpop.permute.xlu0 %845 }
 0x35c   :  { %v852_v35 = vsel %vm324_vm1, %v844_v32, %v846_v4  ;;  %v853_v36 = vsel %vm324_vm1, %v846_v4, %v848_v46 }
 0x35d   :  { %860 = vst [vmem:[#allocation3 + $0x10] sm:$0xf0] %v852_v35  ;;  %861 = vst [vmem:[#allocation3 + $0x98] sm:$0xf0] %v853_v36 }
 0x35f   :  { %v874_v44 = vpop.permute.xlu1 %873  ;;  %v842_v53 = vpop.permute.xlu0 %841 }
 0x360   :  { %v881_v5 = vsel %vm3237_vm0, %v872_v29, %v874_v44  ;;  %v882_v59 = vsel %vm3237_vm0, %v874_v44, %v876_v28  ;;  %v851_v7 = vsel %vm324_vm1, %v842_v53, %v844_v32 }
 0x361   :  { %889 = vst [vmem:[#allocation3 + $0x20] sm:$0xf] %v881_v5  ;;  %890 = vst [vmem:[#allocation3 + $0x48] sm:$0xf] %v882_v59 }
 0x362   :  { %859 = vst [vmem:[#allocation3 + $0x58] sm:$0xf0] %v851_v7 }
 0x363   :  { %v878_v8 = vpop.permute.xlu1 %877  ;;  %v785_v9 = vpop.permute.xlu0 %784 }
 0x364   :  { %v883_v10 = vsel %vm3237_vm0, %v876_v28, %v878_v8  ;;  %v884_v11 = vsel %vm3237_vm0, %v878_v8, %v880_v20  ;;  %v791_v14 = vsel %vm261_vm7, %v2744_v41, %v785_v9  ;;  %v792_v6 = vsel %vm261_vm7, %v785_v9, %v787_v42 }
 0x365   :  { %891 = vst [vmem:[#allocation3 + $0x70] sm:$0xf] %v883_v10  ;;  %892 = vst [vmem:[#allocation3 + $0x90] sm:$0xf] %v884_v11 }
 0x366   :  { %799 = vst [vmem:[#allocation3 + $0x88] sm:$0xf0] %v791_v14  ;;  %800 = vst [vmem:[#allocation3 + $0x28] sm:$0xf0] %v792_v6 }
 0x367   :  { %v813_v16 = vpop.permute.xlu1 %812  ;;  %v709_v19 = vpop.permute.xlu0 %708 }
 0x368   :  { %v820_v22 = vsel %vm292_vm2, %v811_v38, %v813_v16  ;;  %v821_v26 = vsel %vm292_vm2, %v813_v16, %v815_v37  ;;  %v716_v29 = vsel %vm3235_vm9, %v707_v47, %v709_v19  ;;  %v717_v20 = vsel %vm3235_vm9, %v709_v19, %v2748_v51  ;;  %v910_v28 = vld [vmem:[#allocation3 + $0x48] sm:$0xf]  ;;  %v909_v32 = vld [vmem:[#allocation3 + $0x20] sm:$0xf] }
 0x369   :  { %828 = vst [vmem:[#allocation3 + $0x58] sm:$0xf] %v820_v22  ;;  %829 = vst [vmem:[#allocation3 + $0x10] sm:$0xf] %v821_v26  ;;  %v930_v42 = vsel %vm3234_vm3, %v910_v28, 0.0  ;;  %v929_v45 = vsel %vm3231_vm4, %v909_v32, 0.0 }
 0x36a   :  { %724 = vst [vmem:[#allocation3 + $0x30] sm:$0xf] %v716_v29  ;;  %725 = vst [vmem:[#allocation3 + $0x68] sm:$0xf] %v717_v20  ;;  %2168 = vmatprep.subr.msk.mxu0 %vm3233_vm5, %v930_v42  ;;  %vm3238_vm4 = vcmp.ne.f32.partialorder %v2544_v58, 0.0  ;;  %vm3242_vm3 = vcmask 7168  }
 0x36b   :  { %v817_v38 = vpop.permute.xlu1 %816  ;;  %2169 = vmatpush1.msk.msra.mxu0 %vm3233_vm5, %v929_v45  ;;  %v648_v46 = vpop.permute.xlu0 %647  ;;  %v904_v22 = vld [vmem:[#allocation3 + $0x40] sm:$0xff] }
 0x36c   :  { %v822_v47 = vsel %vm292_vm2, %v815_v37, %v817_v38  ;;  %v823_v50 = vsel %vm292_vm2, %v817_v38, %v2740_v21  ;;  %v655_v4 = vsel %vm3236_vm14, %v646_v63, %v648_v46  ;;  %v656_v35 = vsel %vm3236_vm14, %v648_v46, %v2752_v56  ;;  %v912_v36 = vld [vmem:[#allocation3 + $0x90] sm:$0xf] }
 0x36d   :  { %v911_v44 = vld [vmem:[#allocation3 + $0x70] sm:$0xf]  ;;  %830 = vst [vmem:[#allocation3 + $0x98] sm:$0xf] %v822_v47  ;;  %831 = vst [vmem:[#allocation3 + $0x60] sm:$0xf] %v823_v50 }
 0x36e   :  { %663 = vst [vmem:[#allocation3] sm:$0xf] %v655_v4  ;;  %664 = vst [vmem:[#allocation3 + $0x38] sm:$0xf] %v656_v35  ;;  %v932_v53 = vsel %vm3232_vm10, %v912_v36, 0.0  ;;  %v931_v37 = vsel %vm3238_vm4, %v911_v44, 0.0 }
 0x36f   :  { %2179 = vmatprep.subr.msk.mxu1 %vm3233_vm5, %v932_v53  ;;  %v781_v21 = vpop.permute.xlu1 %780  ;;  %v713_v63 = vpop.permute.xlu0 %712  ;;  %vm3239_vm4 = vcmp.ne.f32.partialorder %v2520_v40, 0.0  ;;  %vm3240_vm10 = vcmp.ne.f32.partialorder %v2531_v49, 0.0  ;;  %v902_v10 = vld [vmem:[#allocation3 + $0x88] sm:$0xff] }
 0x370   :  { %2180 = vmatpush1.msk.msra.mxu1 %vm3233_vm5, %v931_v37  ;;  %v790_v5 = vsel %vm261_vm7, %v781_v21, %v2744_v41  ;;  %v718_v59 = vsel %vm3235_vm9, %v2748_v51, %v713_v63  ;;  %v719_v7 = vsel %vm3235_vm9, %v713_v63, %v2756_v61  ;;  %v906_v8 = vld [vmem:[#allocation3 + $0x10] sm:$0xff]  ;;  %v905_v9 = vld [vmem:[#allocation3 + $0x58] sm:$0xff]  ;;  %vm3241_vm5 = vcmp.ne.f32.partialorder %v2552_v62, 0.0  ;;  %vm3243_vm9 = vmmov %vm3242_vm3 }
 0x371   :  { %798 = vst [vmem:[#allocation3 + $0x8] sm:$0xf0] %v790_v5  ;;  %726 = vst [vmem:[#allocation3 + $0x78] sm:$0xf] %v718_v59  ;;  %2170 = vmatprep.subr.msk.mxu0 %vm3239_vm4, %v906_v8  ;;  %vm3248_vm4 = vcmp.ne.f32.partialorder %v2620_v55, 0.0 }
 0x372   :  { %727 = vst [vmem:[#allocation3 + $0x80] sm:$0xf] %v719_v7  ;;  %2171 = vmatpush1.msk.msra.mxu0 %vm3240_vm10, %v905_v9  ;;  %vm3247_vm10 = vcmask 7168   ;;  %v1272_v63 = vld [vmem:[#allocation2 + $0x14] sm:$0xf] }
 0x373   :  { %v742_v11 = vpop.permute.xlu1 %741  ;;  %2172 = vmatprep.subr.msk.mxu0 %vm3241_vm5, %v902_v10  ;;  %v652_v41 = vpop.permute.xlu0 %651  ;;  %vm3244_vm5 = vcmp.ne.f32.partialorder %v2585_v24, 0.0  ;;  %1286 = vrot.lane.b32.xlu0 %v1272_v63, %s2350_s0  ;;  %v1333_v5 = vld [vmem:[#allocation2 + $0x14] sm:$0xf] }
 0x374   :  { %v748_v51 = vsel %vm3242_vm3, %v2742_v39, %v742_v11  ;;  %v749_v61 = vsel %vm3243_vm9, %v742_v11, %v2754_v60  ;;  %v657_v14 = vsel %vm3236_vm14, %v2752_v56, %v652_v41  ;;  %v658_v6 = vsel %vm3236_vm14, %v652_v41, %v2758_v2  ;;  %v908_v16 = vld [vmem:[#allocation3 + $0x60] sm:$0xff]  ;;  %v907_v19 = vld [vmem:[#allocation3 + $0x98] sm:$0xff]  ;;  %v903_v56 = vld [vmem:[#allocation3 + $0x28] sm:$0xff]  ;;  %1347 = vrot.lane.b32.xlu1 %v1333_v5, %s2349_s14 }
 0x375   :  { %756 = vst [vmem:[#allocation3 + $0x68] sm:$0xf0] %v748_v51  ;;  %757 = vst [vmem:[#allocation3 + $0x78] sm:$0xf0] %v749_v61  ;;  %2181 = vmatprep.subr.msk.mxu1 %vm3244_vm5, %v908_v16  ;;  %vm3245_vm3 = vcmp.ne.f32.partialorder %v2589_v27, 0.0  ;;  %vm3246_vm9 = vcmp.ne.f32.partialorder %v2616_v48, 0.0 }
 0x376   :  { %665 = vst [vmem:[#allocation3 + $0x50] sm:$0xf] %v657_v14  ;;  %666 = vst [vmem:[#allocation3 + $0x18] sm:$0xf] %v658_v6  ;;  %2182 = vmatpush1.msk.msra.mxu1 %vm3245_vm3, %v907_v19  ;;  %vm3249_vm14 = vcmp.ne.f32.partialorder %v2556_v3, 0.0  ;;  %vm3250_vm5 = vcmp.ne.f32.partialorder %v2574_v13, 0.0 }
 0x377   :  { %v738_v26 = vpop.permute.xlu1 %737  ;;  %2183 = vmatprep.subr.msk.mxu1 %vm3246_vm9, %v904_v22  ;;  %v683_v20 = vpop.permute.xlu0 %682  ;;  %vm3251_vm3 = vmmov %vm3247_vm10  ;;  %vm3253_vm9 = vcmp.ne.f32.partialorder %v2610_v43, 0.0  ;;  %v2270_v59 = vld [vmem:[#allocation2 + $0x14] ss:$0 sps:$4 sm:$0xff]  }
 0x378   :  { %v747_v2 = vsel %vm3247_vm10, %v738_v26, %v2742_v39  ;;  %2184 = vmatpush1.msk.msra.mxu1 %vm3248_vm4, %v903_v56  ;;  %v901_v29 = vld [vmem:[#allocation3 + $0x8] sm:$0xff]  ;;  %vm3254_vm10 = vcmp.ne.f32.partialorder %v2626_v57, 0.0  ;;  %1317 = vrot.lane.b32.xlu0 %v2270_v59, %s2351_s1  ;;  %v2271_v7 = vld [vmem:[#allocation2 + $0x14] ss:$0 sps:$4 sm:$0xff]   ;;  %vm3255_vm4 = vcmp.ne.f32.partialorder %v2509_v33, 0.0 }
 0x379   :  { %755 = vst [vmem:[#allocation3 + $0x30] sm:$0xf0] %v747_v2  ;;  %2173 = vmatpush1.msk.msra.mxu0 %vm3249_vm14, %v901_v29  ;;  %vm3252_vm14 = vcmp.ne.f32.partialorder %v2595_v30, 0.0 }
 0x37b   :  { %v681_v28 = vpop.permute.xlu1 %680 }
 0x37c   :  { %v687_v32 = vsel %vm154_vm8, %v2750_v52, %v681_v28  ;;  %v688_v42 = vsel %vm154_vm8, %v681_v28, %v683_v20  ;;  %v898_v45 = vld [vmem:[#allocation3 + $0x68] sm:$0xff]  ;;  %1256 = vrot.lane.b32.xlu0 %v2271_v7, %s2352_s15 }
 0x37d   :  { %695 = vst [vmem:[#allocation3 + $0x38] sm:$0xf0] %v687_v32  ;;  %696 = vst [vmem:[#allocation3 + $0x50] sm:$0xf0] %v688_v42  ;;  %2174 = vmatprep.subr.msk.mxu0 %vm3250_vm5, %v898_v45  ;;  %vm3256_vm5 = vcmp.ne.f32.partialorder %v2511_v34, 0.0 }
 0x37f   :  { %v746_v39 = vpop.permute.xlu1 %745 }
 0x380   :  { %v750_v38 = vsel %vm3251_vm3, %v2754_v60, %v746_v39  ;;  %v897_v46 = vld [vmem:[#allocation3 + $0x30] sm:$0xff]  ;;  %v899_v60 = vld [vmem:[#allocation3 + $0x78] sm:$0xff]  ;;  %vm3257_vm3 = vcmask 1043456  }
 0x381   :  { %758 = vst [vmem:[#allocation3 + $0x80] sm:$0xf0] %v750_v38  ;;  %2175 = vmatpush1.msk.msra.mxu0 %vm3252_vm14, %v897_v46  ;;  %vm3258_vm14 = vmmov %vm3257_vm3 }
 0x383   :  { %v677_v47 = vpop.permute.xlu1 %676 }
 0x384   :  { %v686_v50 = vsel %vm154_vm8, %v677_v47, %v2750_v52  ;;  %v894_v4 = vld [vmem:[#allocation3 + $0x38] sm:$0xff]  ;;  %v625_v52 = vld [vmem:[%s3210_s6] sm:$0xf]  ;;  %v895_v21 = vld [vmem:[#allocation3 + $0x50] sm:$0xff]  ;;  %v936_v9 = vpop.permute.xlu0 %935 }
 0x385   :  { %694 = vst [vmem:[#allocation3] sm:$0xf0] %v686_v50  ;;  %2176 = vmatprep.subr.msk.mxu0 %vm3253_vm9, %v894_v4  ;;  %vm3259_vm9 = vcmask 7168  }
 0x387   :  { %v685_v35 = vpop.permute.xlu1 %684 }
 0x388   :  { %v689_v36 = vsel %vm154_vm8, %v683_v20, %v685_v35  ;;  %v900_v44 = vld [vmem:[#allocation3 + $0x80] sm:$0xff] }
 0x389   :  { %697 = vst [vmem:[#allocation3 + $0x18] sm:$0xf0] %v689_v36  ;;  %2185 = vmatprep.subr.msk.mxu1 %vm83_vm13, %v900_v44 }
 0x38a   :  { %2186 = vmatpush1.msk.msra.mxu1 %vm82_vm15, %v899_v60 }
 0x38c   :  { %v893_v53 = vld [vmem:[#allocation3] sm:$0xff] }
 0x38d   :  { %2177 = vmatpush1.msk.msra.mxu0 %vm3254_vm10, %v893_v53  ;;  %vm3260_vm10 = vmmov %vm3259_vm9 }
 0x38e   :  { %2178 = vmatmul.mubr.msk.f32.vlgmr.msra.gmra.mxu0 %vm413_vm11, %v625_v52 }
 0x38f   :  { %1477 = vmatprep.mubr.f32.mxu0 %v2357_v18 }
 0x390   :  { %v896_v37 = vld [vmem:[#allocation3 + $0x18] sm:$0xff] }
 0x391   :  { %2187 = vmatprep.subr.msk.mxu1 %vm79_vm6, %v896_v37 }
 0x392   :  { %2188 = vmatpush1.msk.msra.mxu1 %vm78_vm12, %v895_v21 }
 0x393   :  { %2189 = vmatmul.mubr.msk.f32.vlgmr.msra.gmra.mxu1 %vm413_vm11, %v625_v52 }
 0x394   :  { %1548 = vmatprep.mubr.f32.mxu1 %v2357_v18 }
 0x3e5   :  { %v2896_v50 = vpop.permute.xlu0 %1286 }
 0x3e6   :  { %v1348_v35 = vpop.permute.xlu1 %1347 }
 0x3ea   :  { %v1318_v4 = vpop.permute.xlu0 %1317 }
 0x3ee   :  { %v1257_v36 = vpop.permute.xlu0 %1256 }
 0x44e   :  { %v1019_v8 = vpop.f32.mrf.mxu0 }
 0x44f   :  { %v1020_v11 = vadd.f32 %v1019_v8, %v936_v9 }
 0x450   :  { %v1021_v10 = vpop.f32.mrf.mxu0 }
 0x451   :  { %v1022_v41 = vadd.f32 %v1021_v10, %v936_v9  ;;  %v2301_v32 = vcombine.low %v1020_v11, %v1020_v11 }
 0x453   :  { %v1099_v51 = vcombine.low %v1020_v11, %v1022_v41  ;;  %v1090_v61 = vpop.f32.mrf.mxu1  ;;  %v2298_v6 = vcombine.low %v1022_v41, %v1022_v41 }
 0x454   :  { %v1091_v16 = vadd.f32 %v1090_v61, %v936_v9 }
 0x455   :  { %1103 = vst [vmem:[#allocation2 + $0x4] sm:$0xff] %v1099_v51  ;;  %v1092_v14 = vpop.f32.mrf.mxu1  ;;  %1339 = vrot.lane.b32.xlu1 %v1099_v51, %s2349_s14  ;;  %1235 = vst [vmem:[#allocation3 + $0x8] sm:$0xf] %v1099_v51 }
 0x456   :  { %v1093_v19 = vadd.f32 %v1092_v14, %v936_v9  ;;  %1236 = vst [vmem:[#allocation3 + $0x88] sm:$0xf] %v2298_v6  ;;  %v2300_v28 = vcombine.low %v1091_v16, %v1091_v16 }
 0x458   :  { %v1100_v22 = vcombine.low %v1091_v16, %v1093_v19  ;;  %v2299_v26 = vcombine.low %v1093_v19, %v1093_v19 }
 0x45a   :  { %1104 = vst [vmem:[#allocation2 + $0xc] sm:$0xff] %v1100_v22  ;;  %1343 = vrot.lane.b32.xlu0 %v1100_v22, %s2349_s14  ;;  %1282 = vrot.lane.b32.xlu1 %v1100_v22, %s2350_s0  ;;  %1237 = vst [vmem:[#allocation3 + $0x28] sm:$0xf] %v1100_v22 }
 0x45b   :  { %1238 = vst [vmem:[#allocation3 + $0x40] sm:$0xf] %v2299_v26 }
 0x45c   :  { %v1196_v56 = vld [vmem:[#allocation2] sm:$0xff] }
 0x45d   :  { %v1202_v45 = vcombine.low %v1196_v56, %v1196_v56  ;;  %v1172_v39 = vcombine.high %v1196_v56, %v1196_v56 }
 0x45e   :  { %1311 = vrot.lane.b32.xlu0 %v1099_v51, %s2351_s1  ;;  %1207 = vrot.lane.b32.xlu1 %v1196_v56, %s2354_s17 }
 0x461   :  { %v1167_v2 = vld [vmem:[#allocation2 + $0x8] sm:$0xff]  ;;  %v1168_v29 = vld [vmem:[#allocation2 + $0x10] sm:$0xf] }
 0x462   :  { %1278 = vrot.lane.b32.xlu0 %v1099_v51, %s2350_s0  ;;  %1315 = vrot.lane.b32.xlu1 %v1100_v22, %s2351_s1  ;;  %v1107_v20 = vld [vmem:[#allocation2 + $0x10] sm:$0xf]  ;;  %v1203_v42 = vcombine.low %v1167_v2, %v1167_v2  ;;  %v1173_v46 = vcombine.high %v1167_v2, %v1167_v2 }
 0x463   :  { %v2275_v38 = vld [vmem:[#allocation2 + $0x10] ss:$0 sps:$4 sm:$0xff]  }
 0x464   :  { %v2277_v47 = vld [vmem:[#allocation2 + $0x10] ss:$0 sps:$4 sm:$0xff]  }
 0x466   :  { %1250 = vrot.lane.b32.xlu0 %v1099_v51, %s2352_s15  ;;  %1174 = vrot.lane.b32.xlu1 %v1196_v56, %s2353_s16 }
 0x46a   :  { %1178 = vrot.lane.b32.xlu0 %v1167_v2, %s2353_s16  ;;  %1146 = vrot.lane.b32.xlu1 %v1196_v56, %s2356_s19 }
 0x46e   :  { %1254 = vrot.lane.b32.xlu1 %v1100_v22, %s2352_s15  ;;  %1117 = vrot.lane.b32.xlu0 %v1167_v2, %s2355_s18 }
 0x472   :  { %1182 = vrot.lane.b32.xlu0 %v1168_v29, %s2353_s16  ;;  %1113 = vrot.lane.b32.xlu1 %v1196_v56, %s2355_s18 }
 0x476   :  { %1121 = vrot.lane.b32.xlu0 %v1107_v20, %s2355_s18  ;;  %1211 = vrot.lane.b32.xlu1 %v1167_v2, %s2354_s17 }
 0x47a   :  { %1280 = vrot.lane.b32.xlu0 %v2298_v6, %s2350_s0  ;;  %1341 = vrot.lane.b32.xlu1 %v2298_v6, %s2349_s14 }
 0x47e   :  { %1345 = vrot.lane.b32.xlu0 %v2299_v26, %s2349_s14  ;;  %1313 = vrot.lane.b32.xlu1 %v2300_v28, %s2351_s1 }
 0x482   :  { %1248 = vrot.lane.b32.xlu0 %v2301_v32, %s2352_s15  ;;  %1309 = vrot.lane.b32.xlu1 %v2301_v32, %s2351_s1 }
 0x486   :  { %1209 = vrot.lane.b32.xlu0 %v1203_v42, %s2354_s17  ;;  %1252 = vrot.lane.b32.xlu1 %v2300_v28, %s2352_s15 }
 0x48a   :  { %1205 = vrot.lane.b32.xlu0 %v1202_v45, %s2354_s17  ;;  %1176 = vrot.lane.b32.xlu1 %v1172_v39, %s2353_s16 }
 0x48e   :  { %1148 = vrot.lane.b32.xlu0 %v1203_v42, %s2356_s19  ;;  %1284 = vrot.lane.b32.xlu1 %v2299_v26, %s2350_s0 }
 0x492   :  { %1144 = vrot.lane.b32.xlu0 %v1202_v45, %s2356_s19  ;;  %1115 = vrot.lane.b32.xlu1 %v1172_v39, %s2355_s18 }
 0x496   :  { %1213 = vrot.lane.b32.xlu0 %v2275_v38, %s2354_s17  ;;  %1180 = vrot.lane.b32.xlu1 %v1173_v46, %s2353_s16 }
 0x49a   :  { %1152 = vrot.lane.b32.xlu0 %v2277_v47, %s2356_s19  ;;  %1119 = vrot.lane.b32.xlu1 %v1173_v46, %s2355_s18 }
 0x49e   :  { %1150 = vrot.lane.b32.xlu1 %v1167_v2, %s2356_s19 }
 0x4c7   :  { %v1340_v44 = vpop.permute.xlu1 %1339 }
 0x4cc   :  { %v2898_v60 = vpop.permute.xlu1 %1282  ;;  %v1344_v52 = vpop.permute.xlu0 %1343 }
 0x4d0   :  { %v2900_v53 = vpop.permute.xlu1 %1207  ;;  %v1312_v37 = vpop.permute.xlu0 %1311 }
 0x4d4   :  { %v1316_v21 = vpop.permute.xlu1 %1315  ;;  %v1279_v63 = vpop.permute.xlu0 %1278 }
 0x4d5   :  { %v1322_v5 = vsel %vm324_vm1, %v1316_v21, %v1318_v4 }
 0x4d6   :  { %1330 = vst [vmem:[#allocation3 + $0x60] sm:$0xf0] %v1322_v5 }
 0x4d8   :  { %v2903_v59 = vpop.permute.xlu1 %1174  ;;  %v1251_v7 = vpop.permute.xlu0 %1250 }
 0x4dc   :  { %v2905_v8 = vpop.permute.xlu1 %1146  ;;  %v2907_v9 = vpop.permute.xlu0 %1178 }
 0x4e0   :  { %v1255_v10 = vpop.permute.xlu1 %1254  ;;  %v2909_v11 = vpop.permute.xlu0 %1117 }
 0x4e1   :  { %v1261_v41 = vsel %vm261_vm7, %v1255_v10, %v1257_v36 }
 0x4e2   :  { %1269 = vst [vmem:[#allocation3 + $0x40] sm:$0xf0] %v1261_v41 }
 0x4e4   :  { %v2912_v51 = vpop.permute.xlu1 %1113  ;;  %v2914_v61 = vpop.permute.xlu0 %1182 }
 0x4e8   :  { %v2916_v14 = vpop.permute.xlu1 %1211  ;;  %v2918_v6 = vpop.permute.xlu0 %1121 }
 0x4ec   :  { %v1342_v16 = vpop.permute.xlu1 %1341  ;;  %v1281_v19 = vpop.permute.xlu0 %1280 }
 0x4ed   :  { %v1349_v22 = vsel %vm3237_vm0, %v1340_v44, %v1342_v16  ;;  %v1350_v26 = vsel %vm3237_vm0, %v1342_v16, %v1344_v52  ;;  %v1288_v56 = vsel %vm292_vm2, %v1279_v63, %v1281_v19  ;;  %v1289_v2 = vsel %vm292_vm2, %v1281_v19, %v2898_v60 }
 0x4ee   :  { %1357 = vst [vmem:[#allocation3 + $0x20] sm:$0xf] %v1349_v22  ;;  %1358 = vst [vmem:[#allocation3 + $0x48] sm:$0xf] %v1350_v26 }
 0x4ef   :  { %1296 = vst [vmem:[#allocation3 + $0x58] sm:$0xf] %v1288_v56  ;;  %1297 = vst [vmem:[#allocation3 + $0x10] sm:$0xf] %v1289_v2 }
 0x4f0   :  { %v1314_v29 = vpop.permute.xlu1 %1313  ;;  %v1346_v20 = vpop.permute.xlu0 %1345 }
 0x4f1   :  { %v1320_v28 = vsel %vm324_vm1, %v1312_v37, %v1314_v29  ;;  %v1321_v32 = vsel %vm324_vm1, %v1314_v29, %v1316_v21  ;;  %v1351_v42 = vsel %vm3237_vm0, %v1344_v52, %v1346_v20  ;;  %v1352_v45 = vsel %vm3237_vm0, %v1346_v20, %v1348_v35 }
 0x4f2   :  { %1328 = vst [vmem:[#allocation3 + $0x10] sm:$0xf0] %v1320_v28  ;;  %1329 = vst [vmem:[#allocation3 + $0x98] sm:$0xf0] %v1321_v32 }
 0x4f3   :  { %1359 = vst [vmem:[#allocation3 + $0x70] sm:$0xf] %v1351_v42  ;;  %1360 = vst [vmem:[#allocation3 + $0x90] sm:$0xf] %v1352_v45 }
 0x4f4   :  { %v1310_v39 = vpop.permute.xlu1 %1309  ;;  %v1249_v38 = vpop.permute.xlu0 %1248 }
 0x4f5   :  { %v1319_v46 = vsel %vm324_vm1, %v1310_v39, %v1312_v37  ;;  %v1258_v47 = vsel %vm261_vm7, %v1249_v38, %v1251_v7  ;;  %v1378_v4 = vld [vmem:[#allocation3 + $0x48] sm:$0xf]  ;;  %v1377_v36 = vld [vmem:[#allocation3 + $0x20] sm:$0xf] }
 0x4f6   :  { %1327 = vst [vmem:[#allocation3 + $0x58] sm:$0xf0] %v1319_v46  ;;  %1266 = vst [vmem:[#allocation3 + $0x8] sm:$0xf0] %v1258_v47  ;;  %v1398_v44 = vsel %vm3255_vm4, %v1378_v4, 0.0  ;;  %v1397_v35 = vsel %vm3256_vm5, %v1377_v36, 0.0 }
 0x4f7   :  { %2190 = vmatprep.subr.msk.mxu0 %vm3257_vm3, %v1398_v44  ;;  %vm3261_vm4 = vcmp.ne.f32.partialorder %v2520_v40, 0.0  ;;  %vm3262_vm5 = vcmp.ne.f32.partialorder %v2539_v54, 0.0  ;;  %vm3263_vm3 = vcmp.ne.f32.partialorder %v2544_v58, 0.0 }
 0x4f8   :  { %v1253_v52 = vpop.permute.xlu1 %1252  ;;  %2191 = vmatpush1.msk.msra.mxu0 %vm3258_vm14, %v1397_v35  ;;  %v1210_v21 = vpop.permute.xlu0 %1209 }
 0x4f9   :  { %v1259_v37 = vsel %vm261_vm7, %v1251_v7, %v1253_v52  ;;  %v1260_v63 = vsel %vm261_vm7, %v1253_v52, %v1255_v10  ;;  %v1216_v5 = vsel %vm3259_vm9, %v2900_v53, %v1210_v21  ;;  %v1217_v41 = vsel %vm3260_vm10, %v1210_v21, %v2916_v14  ;;  %v1374_v16 = vld [vmem:[#allocation3 + $0x10] sm:$0xff]  ;;  %vm3264_vm9 = vmmov %vm3258_vm14 }
 0x4fa   :  { %v1380_v19 = vld [vmem:[#allocation3 + $0x90] sm:$0xf]  ;;  %1267 = vst [vmem:[#allocation3 + $0x88] sm:$0xf0] %v1259_v37  ;;  %1268 = vst [vmem:[#allocation3 + $0x28] sm:$0xf0] %v1260_v63  ;;  %2192 = vmatprep.subr.msk.mxu0 %vm3261_vm4, %v1374_v16 }
 0x4fb   :  { %v1379_v22 = vld [vmem:[#allocation3 + $0x70] sm:$0xf]  ;;  %1224 = vst [vmem:[#allocation3 + $0x68] sm:$0xf0] %v1216_v5  ;;  %1225 = vst [vmem:[#allocation3 + $0x78] sm:$0xf0] %v1217_v41 }
 0x4fc   :  { %v1400_v7 = vsel %vm3262_vm5, %v1380_v19, 0.0  ;;  %v1399_v10 = vsel %vm3263_vm3, %v1379_v22, 0.0  ;;  %v1177_v26 = vpop.permute.xlu1 %1176  ;;  %v1206_v56 = vpop.permute.xlu0 %1205  ;;  %vm3265_vm10 = vcmask 121856   ;;  %vm3267_vm4 = vcmask 7168   ;;  %v1372_v5 = vld [vmem:[#allocation3 + $0x40] sm:$0xff] }
 0x4fd   :  { %2201 = vmatprep.subr.msk.mxu1 %vm3258_vm14, %v1400_v7  ;;  %v1184_v2 = vsel %vm3265_vm10, %v2903_v59, %v1177_v26  ;;  %vm3266_vm0 = vmmov %vm3265_vm10  ;;  %v1215_v20 = vsel %vm3267_vm4, %v1206_v56, %v2900_v53  ;;  %v1373_v28 = vld [vmem:[#allocation3 + $0x58] sm:$0xff]  ;;  %vm3268_vm5 = vcmp.ne.f32.partialorder %v2531_v49, 0.0  ;;  %v1369_v53 = vld [vmem:[#allocation3 + $0x8] sm:$0xff]  ;;  %vm3270_vm3 = vcmp.ne.f32.partialorder %v2556_v3, 0.0 }
 0x4fe   :  { %2202 = vmatpush1.msk.msra.mxu1 %vm3264_vm9, %v1399_v10  ;;  %v1185_v29 = vsel %vm3266_vm0, %v1177_v26, %v2907_v9  ;;  %1192 = vst [vmem:[#allocation3 + $0x30] sm:$0xf] %v1184_v2  ;;  %1223 = vst [vmem:[#allocation3 + $0x30] sm:$0xf0] %v1215_v20  ;;  %2193 = vmatpush1.msk.msra.mxu0 %vm3268_vm5, %v1373_v28  ;;  %vm3269_vm0 = vcmp.ne.f32.partialorder %v2552_v62, 0.0  ;;  %vm3271_vm14 = vcmask 138240  }
 0x4ff   :  { %1193 = vst [vmem:[#allocation3 + $0x68] sm:$0xf] %v1185_v29  ;;  %vm3272_vm9 = vmmov %vm3271_vm14  ;;  %vm3273_vm10 = vcmp.ne.f32.partialorder %v2574_v13, 0.0  ;;  %vm3274_vm4 = vcmp.ne.f32.partialorder %v2595_v30, 0.0  ;;  %vm3275_vm5 = vcmask 121856  }
 0x500   :  { %v1285_v32 = vpop.permute.xlu1 %1284  ;;  %v1149_v42 = vpop.permute.xlu0 %1148 }
 0x501   :  { %v1290_v45 = vsel %vm292_vm2, %v2898_v60, %v1285_v32  ;;  %v1291_v59 = vsel %vm292_vm2, %v1285_v32, %v2896_v50  ;;  %v1155_v39 = vsel %vm154_vm8, %v2905_v8, %v1149_v42  ;;  %v1370_v38 = vld [vmem:[#allocation3 + $0x88] sm:$0xff] }
 0x502   :  { %1298 = vst [vmem:[#allocation3 + $0x98] sm:$0xf] %v1290_v45  ;;  %1299 = vst [vmem:[#allocation3 + $0x60] sm:$0xf] %v1291_v59  ;;  %2194 = vmatprep.subr.msk.mxu0 %vm3269_vm0, %v1370_v38 }
 0x503   :  { %1163 = vst [vmem:[#allocation3 + $0x38] sm:$0xf0] %v1155_v39  ;;  %2195 = vmatpush1.msk.msra.mxu0 %vm3270_vm3, %v1369_v53  ;;  %vm3276_vm0 = vmmov %vm3275_vm5  ;;  %vm3277_vm3 = vcmask 7168  }
 0x504   :  { %v1116_v46 = vpop.permute.xlu1 %1115  ;;  %v1145_v47 = vpop.permute.xlu0 %1144 }
 0x505   :  { %v1123_v60 = vsel %vm3271_vm14, %v2912_v51, %v1116_v46  ;;  %v1124_v50 = vsel %vm3272_vm9, %v1116_v46, %v2909_v11  ;;  %v1154_v4 = vsel %vm154_vm8, %v1145_v47, %v2905_v8  ;;  %v1365_v44 = vld [vmem:[#allocation3 + $0x30] sm:$0xff]  ;;  %vm3278_vm14 = vcmp.ne.f32.partialorder %v2585_v24, 0.0 }
 0x506   :  { %v1366_v36 = vld [vmem:[#allocation3 + $0x68] sm:$0xff]  ;;  %1131 = vst [vmem:[#allocation3] sm:$0xf] %v1123_v60  ;;  %1132 = vst [vmem:[#allocation3 + $0x38] sm:$0xf] %v1124_v50  ;;  %vm3279_vm9 = vcmp.ne.f32.partialorder %v2589_v27, 0.0 }
 0x507   :  { %1162 = vst [vmem:[#allocation3] sm:$0xf0] %v1154_v4  ;;  %2196 = vmatprep.subr.msk.mxu0 %vm3273_vm10, %v1366_v36  ;;  %vm3280_vm10 = vcmp.ne.f32.partialorder %v2616_v48, 0.0 }
 0x508   :  { %2197 = vmatpush1.msk.msra.mxu0 %vm3274_vm4, %v1365_v44  ;;  %v1181_v35 = vpop.permute.xlu1 %1180  ;;  %v1214_v52 = vpop.permute.xlu0 %1213  ;;  %vm3281_vm4 = vcmask 138240  }
 0x509   :  { %v1186_v51 = vsel %vm3275_vm5, %v2907_v9, %v1181_v35  ;;  %v1187_v21 = vsel %vm3276_vm0, %v1181_v35, %v2914_v61  ;;  %v1218_v8 = vsel %vm3277_vm3, %v2916_v14, %v1214_v52  ;;  %v1376_v37 = vld [vmem:[#allocation3 + $0x60] sm:$0xff]  ;;  %v1375_v63 = vld [vmem:[#allocation3 + $0x98] sm:$0xff]  ;;  %v1371_v9 = vld [vmem:[#allocation3 + $0x28] sm:$0xff]  ;;  %vm3283_vm0 = vcmp.ne.f32.partialorder %v2620_v55, 0.0 }
 0x50a   :  { %1194 = vst [vmem:[#allocation3 + $0x78] sm:$0xf] %v1186_v51  ;;  %1195 = vst [vmem:[#allocation3 + $0x80] sm:$0xf] %v1187_v21  ;;  %2203 = vmatprep.subr.msk.mxu1 %vm3278_vm14, %v1376_v37  ;;  %vm3284_vm3 = vcmp.ne.f32.partialorder %v2610_v43, 0.0  ;;  %vm3285_vm14 = vcmp.ne.f32.partialorder %v2626_v57, 0.0 }
 0x50b   :  { %1226 = vst [vmem:[#allocation3 + $0x80] sm:$0xf0] %v1218_v8  ;;  %2204 = vmatpush1.msk.msra.mxu1 %vm3279_vm9, %v1375_v63  ;;  %vm3282_vm5 = vmmov %vm3281_vm4  ;;  %vm3286_vm9 = vcmask 1043456  }
 0x50c   :  { %v1120_v41 = vpop.permute.xlu1 %1119  ;;  %2205 = vmatprep.subr.msk.mxu1 %vm3280_vm10, %v1372_v5  ;;  %v1153_v22 = vpop.permute.xlu0 %1152  ;;  %vm3287_vm10 = vmmov %vm3286_vm9 }
 0x50d   :  { %v1125_v61 = vsel %vm3281_vm4, %v2909_v11, %v1120_v41  ;;  %v1126_v14 = vsel %vm3282_vm5, %v1120_v41, %v2918_v6  ;;  %2206 = vmatpush1.msk.msra.mxu1 %vm3283_vm0, %v1371_v9  ;;  %v1362_v16 = vld [vmem:[#allocation3 + $0x38] sm:$0xff]  ;;  %v2292_v11 = vld [vmem:[%s3206_s2] sm:$0xf]  ;;  %vm3288_vm4 = vmmov %vm3286_vm9 }
 0x50e   :  { %v1361_v19 = vld [vmem:[#allocation3] sm:$0xff]  ;;  %1133 = vst [vmem:[#allocation3 + $0x50] sm:$0xf] %v1125_v61  ;;  %1134 = vst [vmem:[#allocation3 + $0x18] sm:$0xf] %v1126_v14  ;;  %2198 = vmatprep.subr.msk.mxu0 %vm3284_vm3, %v1362_v16 }
 0x50f   :  { %2199 = vmatpush1.msk.msra.mxu0 %vm3285_vm14, %v1361_v19  ;;  %vm3289_vm5 = vmmov %vm3288_vm4 }
 0x510   :  { %v1151_v7 = vpop.permute.xlu1 %1150  ;;  %2200 = vmatmul.mubr.msk.f32.vlgmr.msra.gmra.mxu0 %vm413_vm11, %v2292_v11  ;;  %vm3290_vm0 = vmmov %vm3288_vm4 }
 0x511   :  { %v1156_v6 = vsel %vm154_vm8, %v1149_v42, %v1151_v7  ;;  %v1157_v10 = vsel %vm154_vm8, %v1151_v7, %v1153_v22  ;;  %v1367_v56 = vld [vmem:[#allocation3 + $0x78] sm:$0xff]  ;;  %2002 = vmatprep.mubr.f32.mxu0 %v2357_v18  ;;  %vm3291_vm3 = vmmov %vm3290_vm0 }
 0x512   :  { %v1368_v26 = vld [vmem:[#allocation3 + $0x80] sm:$0xff]  ;;  %1164 = vst [vmem:[#allocation3 + $0x50] sm:$0xf0] %v1156_v6  ;;  %1165 = vst [vmem:[#allocation3 + $0x18] sm:$0xf0] %v1157_v10 }
 0x513   :  { %2207 = vmatprep.subr.msk.mxu1 %vm83_vm13, %v1368_v26  ;;  %vm3292_vm14 = vmmov %vm3290_vm0  ;;  %v1789_v10 = vld [vmem:[#allocation2 + $0x14] sm:$0xf]  ;;  %v2293_v26 = vld [vmem:[%s3209_s5] sm:$0xf] }
 0x514   :  { %2208 = vmatpush1.msk.msra.mxu1 %vm82_vm15, %v1367_v56 }
 0x519   :  { %v1364_v2 = vld [vmem:[#allocation3 + $0x18] sm:$0xff]  ;;  %v1363_v29 = vld [vmem:[#allocation3 + $0x50] sm:$0xff] }
 0x51a   :  { %2209 = vmatprep.subr.msk.mxu1 %vm79_vm6, %v1364_v2  ;;  %v2278_v2 = vld [vmem:[#allocation2 + $0x14] ss:$0 sps:$4 sm:$0xff]  }
 0x51b   :  { %2210 = vmatpush1.msk.msra.mxu1 %vm78_vm12, %v1363_v29  ;;  %v1850_v29 = vld [vmem:[#allocation2 + $0x14] sm:$0xf] }
 0x51c   :  { %2211 = vmatmul.mubr.msk.f32.vlgmr.msra.gmra.mxu1 %vm413_vm11, %v2292_v11 }
 0x51d   :  { %2073 = vmatprep.mubr.f32.mxu1 %v2357_v18 }
 0x5d0   :  { %v1479_v20 = vpop.f32.mrf.mxu0 }
 0x5d1   :  { %v1480_v42 = vadd.f32 %v1479_v20, %v2674_v31  ;;  %v2279_v20 = vld [vmem:[#allocation2 + $0x14] ss:$0 sps:$4 sm:$0xff]  }
 0x5d2   :  { %v1481_v28 = vpop.f32.mrf.mxu0 }
 0x5d3   :  { %v1482_v32 = vadd.f32 %v1481_v28, %v2674_v31  ;;  %v1565_v59 = vmul.f32 %v1480_v42, %v1480_v42  ;;  %v1555_v53 = vsel %vm3287_vm10, %v1480_v42, 0.0  ;;  %vm3294_vm10 = vcmask 908288  }
 0x5d5   :  { %v1566_v45 = vmul.f32 %v1482_v32, %v1482_v32  ;;  %v1556_v39 = vsel %vm3286_vm9, %v1482_v32, 0.0  ;;  %v1569_v18 = vsel %vm3289_vm5, %v1565_v59, 0.0  ;;  %vm3293_vm9 = vmmov %vm3290_vm0 }
 0x5d6   :  { %v1557_v60 = vadd.f32 %v1556_v39, %v1555_v53 }
 0x5d7   :  { %v1570_v46 = vsel %vm3288_vm4, %v1566_v45, 0.0  ;;  %vm3295_vm4 = vmmov %vm3294_vm10 }
 0x5d8   :  { %v1571_v52 = vadd.f32 %v1570_v46, %v1569_v18  ;;  %vm3296_vm5 = vmmov %vm3295_vm4 }
 0x5dc   :  { %v1550_v38 = vpop.f32.mrf.mxu1 }
 0x5dd   :  { %v1551_v47 = vadd.f32 %v1550_v38, %v2674_v31 }
 0x5de   :  { %v1552_v50 = vpop.f32.mrf.mxu1 }
 0x5df   :  { %v1558_v4 = vsel %vm3290_vm0, %v1551_v47, 0.0  ;;  %v1567_v36 = vmul.f32 %v1551_v47, %v1551_v47  ;;  %v1553_v44 = vadd.f32 %v1552_v50, %v2674_v31  ;;  %vm3297_vm0 = vmmov %vm3295_vm4 }
 0x5e0   :  { %v1559_v35 = vadd.f32 %v1558_v4, %v1557_v60 }
 0x5e1   :  { %v1568_v51 = vmul.f32 %v1553_v44, %v1553_v44  ;;  %v1560_v21 = vsel %vm3291_vm3, %v1553_v44, 0.0  ;;  %v1572_v8 = vsel %vm3292_vm14, %v1567_v36, 0.0  ;;  %vm3298_vm3 = vcmask 7168  }
 0x5e2   :  { %v1561_v37 = vadd.f32 %v1560_v21, %v1559_v35  ;;  %v1573_v63 = vadd.f32 %v1572_v8, %v1571_v52  ;;  %vm3299_vm14 = vmmov %vm3298_vm3 }
 0x5e3   :  { %v1574_v5 = vsel %vm3293_vm9, %v1568_v51, 0.0  ;;  %vm3300_vm9 = vcmp.ne.f32.partialorder %v2509_v33, 0.0 }
 0x5e4   :  { %1562 = vadd.xlane.f32.xlu1 %v1561_v37  ;;  %v1575_v41 = vadd.f32 %v1574_v5, %v1573_v63 }
 0x5e6   :  { %1576 = vadd.xlane.f32.xlu0 %v1575_v41 }
 0x66d   :  { %v1563_v9 = vpop.xlane.xlu1 %1562 }
 0x66e   :  { %v1564_v61 = vmul.f32 0.001953125, %v1563_v9 }
 0x66f   :  { %v1577_v14 = vpop.xlane.xlu0 %1576 }
 0x670   :  { %v1579_v16 = vmul.f32 %v1564_v61, %v1564_v61  ;;  %v1578_v19 = vmul.f32 0.001953125, %v1577_v14 }
 0x672   :  { %v1580_v31 = vsub.f32 %v1578_v19, %v1579_v16  ;;  %v1619_v19 = vld [vmem:[%s3213_s9] sm:$0xff] }
 0x674   :  { %v1581_v22 = vadd.f32 1e-05, %v1580_v31 }
 0x676   :  { %2288 = vrsqrt.f32 %v1581_v22 }
 0x683   :  { %v2289_v7 = vpop.eup %2288 }
 0x684   :  { %v1583_v11 = vmul.f32 %v2289_v7, %v2691_v17 }
 0x686   :  { %1588 = vperm.xlu0 %2248, %v1583_v11   ;;  %v1584_v6 = vmul.f32 %v1583_v11, %v1564_v61 }
 0x688   :  { %v1585_v56 = vsub.f32 %v2293_v26, %v1584_v6 }
 0x68a   :  { %1597 = vperm.xlu1 %2249, %v1585_v56   ;;  %1803 = vrot.lane.b32.xlu0 %v1789_v10, %s2350_s0 }
 0x68e   :  { %1834 = vrot.lane.b32.xlu0 %v2278_v2, %s2351_s1  ;;  %1864 = vrot.lane.b32.xlu1 %v1850_v29, %s2349_s14 }
 0x692   :  { %1773 = vrot.lane.b32.xlu0 %v2279_v20, %s2352_s15 }
 0x701   :  { %v1589_v17 = vpop.permute.xlu0 %1588 }
 0x702   :  { %v1591_v28 = vmul.f32 %v1589_v17, %v1480_v42  ;;  %v1592_v45 = vmul.f32 %v1589_v17, %v1482_v32  ;;  %v1593_v59 = vmul.f32 %v1589_v17, %v1551_v47  ;;  %v1594_v39 = vmul.f32 %v1589_v17, %v1553_v44 }
 0x705   :  { %v1598_v38 = vpop.permute.xlu1 %1597  ;;  %v3079_v31 = vpop.permute.xlu0 %1803 }
 0x706   :  { %v1600_v53 = vadd.f32 %v1598_v38, %v1591_v28  ;;  %v1601_v46 = vadd.f32 %v1598_v38, %v1592_v45  ;;  %v1602_v60 = vadd.f32 %v1598_v38, %v1593_v59  ;;  %v1603_v50 = vadd.f32 %v1598_v38, %v1594_v39 }
 0x708   :  { %v1604_v18 = vmax.f32 %v1600_v53, 0.0  ;;  %v1605_v4 = vmax.f32 %v1601_v46, 0.0  ;;  %v1606_v36 = vmax.f32 %v1602_v60, 0.0  ;;  %v1607_v35 = vmax.f32 %v1603_v50, 0.0 }
 0x709   :  { %v1835_v22 = vpop.permute.xlu0 %1834  ;;  %v1865_v11 = vpop.permute.xlu1 %1864 }
 0x70a   :  { %v1612_v52 = vcombine.low %v1604_v18, %v1605_v4  ;;  %v1613_v51 = vcombine.low %v1606_v36, %v1607_v35 }
 0x70c   :  { %v1616_v21 = vadd.f32 %v1612_v52, %v2436_v1  ;;  %v1617_v8 = vadd.f32 %v1613_v51, %v2431_v0 }
 0x70d   :  { %v1774_v7 = vpop.permute.xlu0 %1773 }
 0x70e   :  { %1620 = vst [vmem:[#allocation2 + $0x4] sm:$0xff] %v1616_v21  ;;  %1621 = vst [vmem:[#allocation2 + $0xc] sm:$0xff] %v1617_v8  ;;  %1860 = vrot.lane.b32.xlu0 %v1617_v8, %s2349_s14  ;;  %v1855_v32 = vcombine.high %v1617_v8, %v1617_v8  ;;  %1856 = vrot.lane.b32.xlu1 %v1616_v21, %s2349_s14  ;;  %v1854_v42 = vcombine.high %v1616_v21, %v1616_v21 }
 0x70f   :  { %1752 = vst [vmem:[#allocation3 + $0x8] sm:$0xf] %v1616_v21  ;;  %1754 = vst [vmem:[#allocation3 + $0x28] sm:$0xf] %v1617_v8  ;;  %v1823_v37 = vcombine.low %v1616_v21, %v1616_v21  ;;  %v1824_v63 = vcombine.low %v1617_v8, %v1617_v8 }
 0x710   :  { %1753 = vst [vmem:[#allocation3 + $0x88] sm:$0xf] %v1854_v42  ;;  %1755 = vst [vmem:[#allocation3 + $0x40] sm:$0xf] %v1855_v32 }
 0x712   :  { %1799 = vrot.lane.b32.xlu1 %v1617_v8, %s2350_s0  ;;  %1828 = vrot.lane.b32.xlu0 %v1616_v21, %s2351_s1 }
 0x715   :  { %v1713_v47 = vld [vmem:[#allocation2] sm:$0xff]  ;;  %v1684_v0 = vld [vmem:[#allocation2 + $0x8] sm:$0xff]  ;;  %v1685_v1 = vld [vmem:[#allocation2 + $0x10] sm:$0xf] }
 0x716   :  { %1795 = vrot.lane.b32.xlu0 %v1616_v21, %s2350_s0  ;;  %1724 = vrot.lane.b32.xlu1 %v1713_v47, %s2354_s17  ;;  %v1624_v44 = vld [vmem:[#allocation2 + $0x10] sm:$0xf]  ;;  %v1720_v5 = vcombine.low %v1684_v0, %v1684_v0  ;;  %v1719_v41 = vcombine.low %v1713_v47, %v1713_v47  ;;  %v1689_v9 = vcombine.high %v1713_v47, %v1713_v47 }
 0x717   :  { %v2284_v61 = vld [vmem:[#allocation2 + $0x10] ss:$0 sps:$4 sm:$0xff]   ;;  %v1690_v14 = vcombine.high %v1684_v0, %v1684_v0 }
 0x718   :  { %v2285_v16 = vld [vmem:[#allocation2 + $0x10] ss:$0 sps:$4 sm:$0xff]  }
 0x71a   :  { %1767 = vrot.lane.b32.xlu0 %v1616_v21, %s2352_s15  ;;  %1832 = vrot.lane.b32.xlu1 %v1617_v8, %s2351_s1 }
 0x71e   :  { %1695 = vrot.lane.b32.xlu0 %v1684_v0, %s2353_s16  ;;  %1691 = vrot.lane.b32.xlu1 %v1713_v47, %s2353_s16 }
 0x722   :  { %1663 = vrot.lane.b32.xlu1 %v1713_v47, %s2356_s19  ;;  %1634 = vrot.lane.b32.xlu0 %v1684_v0, %s2355_s18 }
 0x726   :  { %1771 = vrot.lane.b32.xlu1 %v1617_v8, %s2352_s15  ;;  %1699 = vrot.lane.b32.xlu0 %v1685_v1, %s2353_s16 }
 0x72a   :  { %1638 = vrot.lane.b32.xlu0 %v1624_v44, %s2355_s18  ;;  %1630 = vrot.lane.b32.xlu1 %v1713_v47, %s2355_s18 }
 0x72e   :  { %1797 = vrot.lane.b32.xlu0 %v1854_v42, %s2350_s0  ;;  %1728 = vrot.lane.b32.xlu1 %v1684_v0, %s2354_s17 }
 0x732   :  { %1862 = vrot.lane.b32.xlu0 %v1855_v32, %s2349_s14  ;;  %1858 = vrot.lane.b32.xlu1 %v1854_v42, %s2349_s14 }
 0x736   :  { %1765 = vrot.lane.b32.xlu0 %v1823_v37, %s2352_s15  ;;  %1830 = vrot.lane.b32.xlu1 %v1824_v63, %s2351_s1 }
 0x73a   :  { %1726 = vrot.lane.b32.xlu0 %v1720_v5, %s2354_s17  ;;  %1826 = vrot.lane.b32.xlu1 %v1823_v37, %s2351_s1 }
 0x73e   :  { %1722 = vrot.lane.b32.xlu0 %v1719_v41, %s2354_s17  ;;  %1769 = vrot.lane.b32.xlu1 %v1824_v63, %s2352_s15 }
 0x742   :  { %1665 = vrot.lane.b32.xlu0 %v1720_v5, %s2356_s19  ;;  %1693 = vrot.lane.b32.xlu1 %v1689_v9, %s2353_s16 }
 0x746   :  { %1661 = vrot.lane.b32.xlu0 %v1719_v41, %s2356_s19  ;;  %1801 = vrot.lane.b32.xlu1 %v1855_v32, %s2350_s0 }
 0x74a   :  { %1730 = vrot.lane.b32.xlu0 %v2284_v61, %s2354_s17  ;;  %1632 = vrot.lane.b32.xlu1 %v1689_v9, %s2355_s18 }
 0x74e   :  { %1669 = vrot.lane.b32.xlu0 %v2285_v16, %s2356_s19  ;;  %1697 = vrot.lane.b32.xlu1 %v1690_v14, %s2353_s16  ;;  %s2359_s16 = smov [#allocation7]  }
 0x74f   :  { %s2137_s17 = sshll.u32 %s2359_s16, 4  ;;  %s2138_s17 = int_to_ptr.vmem [resolvable:$true] %s2137_s17 }
 0x750   :  { %p2327_p6 = scmp.lt.s32.totalorder %s2138_s17, %s2138_s17 }
 0x752   :  { %1636 = vrot.lane.b32.xlu1 %v1690_v14, %s2355_s18 }
 0x756   :  { %1667 = vrot.lane.b32.xlu1 %v1684_v0, %s2356_s19 }
 0x75a   :  { %1920 = vperm.xlu1 %2249, %v1619_v19  }
 0x780   :  { %v1861_v6 = vpop.permute.xlu0 %1860  ;;  %v1857_v10 = vpop.permute.xlu1 %1856 }
 0x784   :  { %v1829_v26 = vpop.permute.xlu0 %1828  ;;  %v3081_v56 = vpop.permute.xlu1 %1799 }
 0x788   :  { %v1796_v2 = vpop.permute.xlu0 %1795  ;;  %v1725_v29 = vpop.permute.xlu1 %1724 }
 0x78c   :  { %v1768_v20 = vpop.permute.xlu0 %1767  ;;  %v1833_v17 = vpop.permute.xlu1 %1832 }
 0x78d   :  { %v1839_v28 = vsel %vm324_vm1, %v1833_v17, %v1835_v22 }
 0x78e   :  { %1847 = vst [vmem:[#allocation3 + $0x60] sm:$0xf0] %v1839_v28 }
 0x790   :  { %v3084_v45 = vpop.permute.xlu0 %1695  ;;  %v3086_v59 = vpop.permute.xlu1 %1691 }
 0x794   :  { %v3088_v39 = vpop.permute.xlu0 %1634  ;;  %v3090_v38 = vpop.permute.xlu1 %1663 }
 0x798   :  { %v3092_v53 = vpop.permute.xlu0 %1699  ;;  %v1772_v46 = vpop.permute.xlu1 %1771 }
 0x799   :  { %v1778_v60 = vsel %vm261_vm7, %v1772_v46, %v1774_v7 }
 0x79a   :  { %1786 = vst [vmem:[#allocation3 + $0x40] sm:$0xf0] %v1778_v60 }
 0x79c   :  { %v3095_v50 = vpop.permute.xlu0 %1638  ;;  %v3097_v18 = vpop.permute.xlu1 %1630 }
 0x7a0   :  { %v1798_v4 = vpop.permute.xlu0 %1797  ;;  %v3099_v36 = vpop.permute.xlu1 %1728 }
 0x7a1   :  { %v1805_v35 = vsel %vm292_vm2, %v1796_v2, %v1798_v4  ;;  %v1806_v52 = vsel %vm292_vm2, %v1798_v4, %v3081_v56 }
 0x7a2   :  { %1813 = vst [vmem:[#allocation3 + $0x58] sm:$0xf] %v1805_v35  ;;  %1814 = vst [vmem:[#allocation3 + $0x10] sm:$0xf] %v1806_v52 }
 0x7a4   :  { %v1863_v51 = vpop.permute.xlu0 %1862  ;;  %v1859_v21 = vpop.permute.xlu1 %1858 }
 0x7a5   :  { %v1868_v8 = vsel %vm3294_vm10, %v1861_v6, %v1863_v51  ;;  %v1869_v32 = vsel %vm3295_vm4, %v1863_v51, %v1865_v11  ;;  %v1866_v42 = vsel %vm3296_vm5, %v1857_v10, %v1859_v21  ;;  %v1867_v47 = vsel %vm3297_vm0, %v1859_v21, %v1861_v6 }
 0x7a6   :  { %1876 = vst [vmem:[#allocation3 + $0x70] sm:$0xf] %v1868_v8  ;;  %1877 = vst [vmem:[#allocation3 + $0x90] sm:$0xf] %v1869_v32  ;;  %vm3301_vm10 = vcmp.ne.f32.partialorder %v2539_v54, 0.0  ;;  %vm3302_vm4 = vcmp.ne.f32.partialorder %v2511_v34, 0.0 }
 0x7a7   :  { %1874 = vst [vmem:[#allocation3 + $0x20] sm:$0xf] %v1866_v42  ;;  %1875 = vst [vmem:[#allocation3 + $0x48] sm:$0xf] %v1867_v47  ;;  %vm3303_vm5 = vcmask 1043456  }
 0x7a8   :  { %v1766_v0 = vpop.permute.xlu0 %1765  ;;  %v1831_v1 = vpop.permute.xlu1 %1830  ;;  %vm3304_vm0 = vmmov %vm3303_vm5 }
 0x7a9   :  { %v1775_v44 = vsel %vm261_vm7, %v1766_v0, %v1768_v20  ;;  %v1837_v37 = vsel %vm324_vm1, %v1829_v26, %v1831_v1  ;;  %v1838_v63 = vsel %vm324_vm1, %v1831_v1, %v1833_v17 }
 0x7aa   :  { %1783 = vst [vmem:[#allocation3 + $0x8] sm:$0xf0] %v1775_v44  ;;  %1845 = vst [vmem:[#allocation3 + $0x10] sm:$0xf0] %v1837_v37 }
 0x7ab   :  { %1846 = vst [vmem:[#allocation3 + $0x98] sm:$0xf0] %v1838_v63 }
 0x7ac   :  { %v1727_v5 = vpop.permute.xlu0 %1726  ;;  %v1827_v41 = vpop.permute.xlu1 %1826 }
 0x7ad   :  { %v1733_v9 = vsel %vm3298_vm3, %v1725_v29, %v1727_v5  ;;  %v1734_v61 = vsel %vm3299_vm14, %v1727_v5, %v3099_v36  ;;  %v1836_v14 = vsel %vm324_vm1, %v1827_v41, %v1829_v26  ;;  %v1897_v19 = vld [vmem:[#allocation3 + $0x90] sm:$0xf]  ;;  %vm3305_vm1 = vcmp.ne.f32.partialorder %v2544_v58, 0.0  ;;  %vm3306_vm3 = vmmov %vm3304_vm0 }
 0x7ae   :  { %v1895_v16 = vld [vmem:[#allocation3 + $0x48] sm:$0xf]  ;;  %v1894_v22 = vld [vmem:[#allocation3 + $0x20] sm:$0xf]  ;;  %1741 = vst [vmem:[#allocation3 + $0x68] sm:$0xf0] %v1733_v9  ;;  %vm3307_vm14 = vmmov %vm3304_vm0 }
 0x7af   :  { %1742 = vst [vmem:[#allocation3 + $0x78] sm:$0xf0] %v1734_v61  ;;  %1844 = vst [vmem:[#allocation3 + $0x58] sm:$0xf0] %v1836_v14  ;;  %v1915_v7 = vsel %vm3300_vm9, %v1895_v16, 0.0  ;;  %v1917_v11 = vsel %vm3301_vm10, %v1897_v19, 0.0 }
 0x7b0   :  { %v1914_v6 = vsel %vm3302_vm4, %v1894_v22, 0.0  ;;  %v1896_v10 = vld [vmem:[#allocation3 + $0x70] sm:$0xf]  ;;  %2212 = vmatprep.subr.msk.mxu0 %vm3303_vm5, %v1915_v7  ;;  %2223 = vmatprep.subr.msk.mxu1 %vm3304_vm0, %v1917_v11  ;;  %v1723_v2 = vpop.permute.xlu0 %1722  ;;  %v1770_v33 = vpop.permute.xlu1 %1769  ;;  %vm3308_vm9 = vcmask 7168   ;;  %vm3309_vm10 = vcmp.ne.f32.partialorder %v2520_v40, 0.0  ;;  %vm3310_vm4 = vcmask 121856  }
 0x7b1   :  { %v1916_v26 = vsel %vm3305_vm1, %v1896_v10, 0.0  ;;  %2213 = vmatpush1.msk.msra.mxu0 %vm3306_vm3, %v1914_v6  ;;  %v1732_v54 = vsel %vm3308_vm9, %v1723_v2, %v1725_v29  ;;  %v1776_v17 = vsel %vm261_vm7, %v1768_v20, %v1770_v33  ;;  %v1777_v34 = vsel %vm261_vm7, %v1770_v33, %v1772_v46  ;;  %v1891_v28 = vld [vmem:[#allocation3 + $0x10] sm:$0xff]  ;;  %vm3311_vm5 = vmmov %vm3310_vm4 }
 0x7b2   :  { %2224 = vmatpush1.msk.msra.mxu1 %vm3307_vm14, %v1916_v26  ;;  %1740 = vst [vmem:[#allocation3 + $0x30] sm:$0xf0] %v1732_v54  ;;  %1784 = vst [vmem:[#allocation3 + $0x88] sm:$0xf0] %v1776_v17  ;;  %2214 = vmatprep.subr.msk.mxu0 %vm3309_vm10, %v1891_v28  ;;  %vm3312_vm7 = vcmp.ne.f32.partialorder %v2531_v49, 0.0  ;;  %vm3313_vm0 = vcmp.ne.f32.partialorder %v2552_v62, 0.0 }
 0x7b3   :  { %1785 = vst [vmem:[#allocation3 + $0x28] sm:$0xf0] %v1777_v34  ;;  %v1886_v49 = vld [vmem:[#allocation3 + $0x8] sm:$0xff]  ;;  %vm3314_vm1 = vcmp.ne.f32.partialorder %v2556_v3, 0.0  ;;  %vm3315_vm3 = vmmov %vm3308_vm9  ;;  %vm3316_vm14 = vcmask 138240   ;;  %vm3318_vm9 = vcmp.ne.f32.partialorder %v2574_v13, 0.0 }
 0x7b4   :  { %v1666_v58 = vpop.permute.xlu0 %1665  ;;  %v1694_v60 = vpop.permute.xlu1 %1693  ;;  %vm3319_vm10 = vcmp.ne.f32.partialorder %v2595_v30, 0.0  ;;  %v1889_v13 = vld [vmem:[#allocation3 + $0x40] sm:$0xff] }
 0x7b5   :  { %v1672_v4 = vsel %vm154_vm8, %v3090_v38, %v1666_v58  ;;  %v1701_v35 = vsel %vm3310_vm4, %v3086_v59, %v1694_v60  ;;  %v1702_v29 = vsel %vm3311_vm5, %v1694_v60, %v3084_v45  ;;  %vm3320_vm5 = vmmov %vm3310_vm4 }
 0x7b6   :  { %v1890_v20 = vld [vmem:[#allocation3 + $0x58] sm:$0xff]  ;;  %1680 = vst [vmem:[#allocation3 + $0x38] sm:$0xf0] %v1672_v4  ;;  %1709 = vst [vmem:[#allocation3 + $0x30] sm:$0xf] %v1701_v35  ;;  %v2080_v35 = vld [vmem:[%s3214_s10] sm:$0xff] }
 0x7b7   :  { %1710 = vst [vmem:[#allocation3 + $0x68] sm:$0xf] %v1702_v29  ;;  %2215 = vmatpush1.msk.msra.mxu0 %vm3312_vm7, %v1890_v20  ;;  %vm3321_vm7 = vcmp.ne.f32.partialorder %v2585_v24, 0.0  ;;  %s2322_s10 = scalar_lea.vmem %s2138_s17, 512 }
 0x7b8   :  { %v1662_v40 = vpop.permute.xlu0 %1661  ;;  %v1802_v46 = vpop.permute.xlu1 %1801  ;;  %p2323_p5 = scmp.ne.s32.totalorder %s2138_s17, %s2322_s10  ;;  %p2328_p7 = scmp.lt.s32.totalorder %s2322_s10, %s2322_s10 }
 0x7b9   :  { %v1671_v52 = vsel %vm154_vm8, %v1662_v40, %v3090_v38  ;;  %v1807_v51 = vsel %vm292_vm2, %v3081_v56, %v1802_v46  ;;  %v1808_v59 = vsel %vm292_vm2, %v1802_v46, %v3079_v31  ;;  %v1887_v21 = vld [vmem:[#allocation3 + $0x88] sm:$0xff]  ;;  %vm3317_vm2 = vmmov %vm3316_vm14 }
 0x7ba   :  { %1679 = vst [vmem:[#allocation3] sm:$0xf0] %v1671_v52  ;;  %1815 = vst [vmem:[#allocation3 + $0x98] sm:$0xf] %v1807_v51  ;;  %2216 = vmatprep.subr.msk.mxu0 %vm3313_vm0, %v1887_v21  ;;  %vm3322_vm0 = vcmp.ne.f32.partialorder %v2589_v27, 0.0  ;;  %v1888_v1 = vld [vmem:[#allocation3 + $0x28] sm:$0xff]  ;;  %p2329_p8 = por %p2328_p7, %p2327_p6 }
 0x7bb   :  { %1816 = vst [vmem:[#allocation3 + $0x60] sm:$0xf] %v1808_v59  ;;  %2217 = vmatpush1.msk.msra.mxu0 %vm3314_vm1, %v1886_v49  ;;  %vm3323_vm1 = vcmp.ne.f32.partialorder %v2616_v48, 0.0  ;;  %v1618_v27 = vld [vmem:[%s3212_s8] sm:$0xff] }
 0x7bc   :  { %v1731_v8 = vpop.permute.xlu0 %1730  ;;  %v1633_v32 = vpop.permute.xlu1 %1632  ;;  %v2081_v40 = vld [vmem:[%s3215_s11] sm:$0xff]  ;;  %p2330_p9 = pnand %p2329_p8, %p2323_p5 }
 0x7bd   :  { %v1735_v38 = vsel %vm3315_vm3, %v3099_v36, %v1731_v8  ;;  %v1640_v56 = vsel %vm3316_vm14, %v3097_v18, %v1633_v32  ;;  %v1641_v31 = vsel %vm3317_vm2, %v1633_v32, %v3088_v39  ;;  %v1882_v47 = vld [vmem:[#allocation3 + $0x30] sm:$0xff]  ;;  %vm3324_vm3 = vmmov %vm3317_vm2 }
 0x7be   :  { %v1883_v42 = vld [vmem:[#allocation3 + $0x68] sm:$0xff]  ;;  %1743 = vst [vmem:[#allocation3 + $0x80] sm:$0xf0] %v1735_v38  ;;  %1648 = vst [vmem:[#allocation3] sm:$0xf] %v1640_v56 }
 0x7bf   :  { %1649 = vst [vmem:[#allocation3 + $0x38] sm:$0xf] %v1641_v31  ;;  %2218 = vmatprep.subr.msk.mxu0 %vm3318_vm9, %v1883_v42  ;;  %vm3325_vm14 = vmmov %vm3317_vm2  ;;  %vm3326_vm2 = vcmp.ne.f32.partialorder %v2620_v55, 0.0  ;;  %vm3327_vm9 = vcmp.ne.f32.partialorder %v2610_v43, 0.0 }
 0x7c0   :  { %2219 = vmatpush1.msk.msra.mxu0 %vm3319_vm10, %v1882_v47  ;;  %v1698_v62 = vpop.permute.xlu1 %1697  ;;  %vm3328_vm10 = vcmp.ne.f32.partialorder %v2626_v57, 0.0  ;;  %v1670_v48 = vpop.permute.xlu0 %1669 }
 0x7c1   :  { %v1703_v3 = vsel %vm3310_vm4, %v3084_v45, %v1698_v62  ;;  %v1704_v18 = vsel %vm3320_vm5, %v1698_v62, %v3092_v53  ;;  %v1892_v0 = vld [vmem:[#allocation3 + $0x98] sm:$0xff] }
 0x7c2   :  { %v1893_v36 = vld [vmem:[#allocation3 + $0x60] sm:$0xff]  ;;  %1711 = vst [vmem:[#allocation3 + $0x78] sm:$0xf] %v1703_v3  ;;  %1712 = vst [vmem:[#allocation3 + $0x80] sm:$0xf] %v1704_v18 }
 0x7c3   :  { %2225 = vmatprep.subr.msk.mxu1 %vm3321_vm7, %v1893_v36 }
 0x7c4   :  { %2226 = vmatpush1.msk.msra.mxu1 %vm3322_vm0, %v1892_v0  ;;  %v1637_v30 = vpop.permute.xlu1 %1636 }
 0x7c5   :  { %2227 = vmatprep.subr.msk.mxu1 %vm3323_vm1, %v1889_v13  ;;  %v1642_v45 = vsel %vm3324_vm3, %v3088_v39, %v1637_v30  ;;  %v1643_v53 = vsel %vm3325_vm14, %v1637_v30, %v3095_v50  ;;  %v1878_v44 = vld [vmem:[#allocation3] sm:$0xff] }
 0x7c6   :  { %2228 = vmatpush1.msk.msra.mxu1 %vm3326_vm2, %v1888_v1  ;;  %v1879_v24 = vld [vmem:[#allocation3 + $0x38] sm:$0xff]  ;;  %1650 = vst [vmem:[#allocation3 + $0x50] sm:$0xf] %v1642_v45  ;;  %1651 = vst [vmem:[#allocation3 + $0x18] sm:$0xf] %v1643_v53 }
 0x7c7   :  { %2220 = vmatprep.subr.msk.mxu0 %vm3327_vm9, %v1879_v24 }
 0x7c8   :  { %2221 = vmatpush1.msk.msra.mxu0 %vm3328_vm10, %v1878_v44  ;;  %v1668_v39 = vpop.permute.xlu1 %1667 }
 0x7c9   :  { %2222 = vmatmul.mubr.msk.f32.vlgmr.msra.gmra.mxu0 %vm413_vm11, %v1618_v27  ;;  %v1673_v55 = vsel %vm154_vm8, %v1666_v58, %v1668_v39  ;;  %v1674_v50 = vsel %vm154_vm8, %v1668_v39, %v1670_v48  ;;  %v1885_v37 = vld [vmem:[#allocation3 + $0x80] sm:$0xff]  ;;  %v1884_v63 = vld [vmem:[#allocation3 + $0x78] sm:$0xff] }
 0x7ca   :  { %1681 = vst [vmem:[#allocation3 + $0x50] sm:$0xf0] %v1673_v55  ;;  %1682 = vst [vmem:[#allocation3 + $0x18] sm:$0xf0] %v1674_v50  ;;  %2229 = vmatprep.subr.msk.mxu1 %vm83_vm13, %v1885_v37 }
 0x7cb   :  { %2230 = vmatpush1.msk.msra.mxu1 %vm82_vm15, %v1884_v63 }
 0x7d1   :  { %v1881_v43 = vld [vmem:[#allocation3 + $0x18] sm:$0xff]  ;;  %v1880_v57 = vld [vmem:[#allocation3 + $0x50] sm:$0xff] }
 0x7d2   :  { %2231 = vmatprep.subr.msk.mxu1 %vm79_vm6, %v1881_v43 }
 0x7d3   :  { %2232 = vmatpush1.msk.msra.mxu1 %vm78_vm12, %v1880_v57 }
 0x7d4   :  { %2233 = vmatmul.mubr.msk.f32.vlgmr.msra.gmra.mxu1 %vm413_vm11, %v1618_v27 }
 0x7d5   :  { %v1921_v9 = vpop.permute.xlu1 %1920 }
 0x889   :  { %v2004_v5 = vpop.f32.mrf.mxu0 }
 0x88a   :  { %v2005_v14 = vadd.f32 %v2004_v5, %v1921_v9 }
 0x88b   :  { %v2006_v41 = vpop.f32.mrf.mxu0 }
 0x88c   :  { %v2007_v61 = vadd.f32 %v2006_v41, %v1921_v9  ;;  %v2088_v19 = vmul.f32 %v2005_v14, %v2005_v14 }
 0x88e   :  { %v2089_v12 = vmul.f32 %v2007_v61, %v2007_v61  ;;  %v2082_v15 = vadd.f32 %v2007_v61, %v2005_v14 }
 0x890   :  { %v2092_v11 = vadd.f32 %v2089_v12, %v2088_v19 }
 0x894   :  { %v2075_v16 = vpop.f32.mrf.mxu1 }
 0x895   :  { %v2076_v22 = vadd.f32 %v2075_v16, %v1921_v9 }
 0x896   :  { %v2077_v7 = vpop.f32.mrf.mxu1 }
 0x897   :  { %v2083_v6 = vadd.f32 %v2082_v15, %v2076_v22  ;;  %v2090_v23 = vmul.f32 %v2076_v22, %v2076_v22  ;;  %v2078_v10 = vadd.f32 %v2077_v7, %v1921_v9 }
 0x899   :  { %v2091_v26 = vmul.f32 %v2078_v10, %v2078_v10  ;;  %v2084_v25 = vadd.f32 %v2083_v6, %v2078_v10  ;;  %v2093_v2 = vadd.f32 %v2092_v11, %v2090_v23 }
 0x89b   :  { %2085 = vadd.xlane.f32.xlu0 %v2084_v25  ;;  %v2094_v33 = vadd.f32 %v2093_v2, %v2091_v26 }
 0x89d   :  { %2095 = vadd.xlane.f32.xlu1 %v2094_v33 }
 0x924   :  { %v2086_v54 = vpop.xlane.xlu0 %2085 }
 0x925   :  { %v2087_v17 = vmul.f32 0.001953125, %v2086_v54 }
 0x926   :  { %v2096_v34 = vpop.xlane.xlu1 %2095 }
 0x927   :  { %v2098_v28 = vmul.f32 %v2087_v17, %v2087_v17  ;;  %v2097_v58 = vmul.f32 0.001953125, %v2096_v34 }
 0x929   :  { %v2099_v60 = vsub.f32 %v2097_v58, %v2098_v28 }
 0x92b   :  { %v2100_v4 = vadd.f32 1e-05, %v2099_v60 }
 0x92d   :  { %2290 = vrsqrt.f32 %v2100_v4 }
 0x93a   :  { %v2291_v29 = vpop.eup %2290 }
 0x93b   :  { %v2102_v20 = vmul.f32 %v2291_v29, %v2080_v35 }
 0x93d   :  { %2107 = vperm.xlu0 %2248, %v2102_v20   ;;  %v2103_v46 = vmul.f32 %v2102_v20, %v2087_v17 }
 0x93f   :  { %v2104_v52 = vsub.f32 %v2081_v40, %v2103_v46 }
 0x941   :  { %2116 = vperm.xlu1 %2249, %v2104_v52  }
 0x9b8   :  { %v2108_v51 = vpop.permute.xlu0 %2107 }
 0x9b9   :  { %v2110_v59 = vmul.f32 %v2108_v51, %v2005_v14  ;;  %v2111_v21 = vmul.f32 %v2108_v51, %v2007_v61  ;;  %v2112_v49 = vmul.f32 %v2108_v51, %v2076_v22  ;;  %v2113_v8 = vmul.f32 %v2108_v51, %v2078_v10 }
 0x9bc   :  { %v2117_v32 = vpop.permute.xlu1 %2116 }
 0x9bd   :  { %v2119_v38 = vadd.f32 %v2117_v32, %v2110_v59  ;;  %v2120_v56 = vadd.f32 %v2117_v32, %v2111_v21  ;;  %v2121_v31 = vadd.f32 %v2117_v32, %v2112_v49  ;;  %v2122_v42 = vadd.f32 %v2117_v32, %v2113_v8 }
 0x9bf   :  { %v2123_v47 = vmax.f32 %v2119_v38, 0.0  ;;  %v2124_v62 = vmax.f32 %v2120_v56, 0.0  ;;  %v2125_v3 = vmax.f32 %v2121_v31, 0.0  ;;  %v2126_v18 = vmax.f32 %v2122_v42, 0.0 }
 0x9c1   :  { %2127 = vst [vmem:[#allocation7] sm:$0xff] %v2123_v47  ;;  %2128 = vst [vmem:[#allocation7 + $0x8] sm:$0xff] %v2124_v62 }
 0x9c2   :  { %2129 = vst [vmem:[#allocation7 + $0x10] sm:$0xff] %v2125_v3  ;;  %2130 = vst [vmem:[#allocation7 + $0x18] sm:$0xff] %v2126_v18 }
 0x9c3   :  { %2333 = shalt.err (!%p2330_p9)
}
 0x9c4   :  { %2140 = dma.vmem_to_hbm [thread:$0]  %s2138_s17, 512, %s3216_s12, [#allocation6]  }
 0x9c5   :  { %2344 = dma.done.wait [#allocation6], 512  }
 0x9c6   :  { %2345 = vsyncadd [#allocation6], 4294966784 }
 0x9c7   :  { %2144 = vsyncpa [#allocation5], 1 }
 0x9c8   :  { %2145 = vsyncpa [#allocation6], 1 }

</bundles_post_ra>
